<compile_context>
chip_gen: v7x
topology: tpu7x:2x2x1
jax: 0.10.0
libtpu: 0.0.40
codegen_flags: <defaults>
</compile_context>

<pallas_src>
import numpy as np

import jax
import jax.numpy as jnp
from jax.experimental import pallas as pl
from jax.experimental.pallas import tpu as pltpu


# --------------------------- fused Pallas kernel ----------------------------
#
# Per-image data layout (2-D everywhere, H in sublanes, (w, c) in lanes):
#   A0   : (32, 96)    col = w*3  + ci          (NHWC input row-flattened)
#   OUT1 : (28, 168)   col = wo*6 + co          (conv1, pre-bias)
#   P1   : (14, 162)   valid cols = 12*w + ci   (pool1+bias+relu, uncompacted)
#   OUT2 : (10, 160)   col = wo*16 + co         (conv2, pre-bias)
#   P2   : (5, 144)    valid cols = 32*w + co   (pool2+bias+relu, uncompacted)
# conv k: OUT = sum_dh  IN[dh:dh+Ho, :] @ T[dh]   (T = Toeplitz-expanded weight)

def _lenet_kernel(x_ref, t1_ref, b1_ref, rsel1_ref, t2_ref, b2_ref, rsel2_ref,
                  wfc1_ref, bfc1_ref, wfc2_ref, bfc2_ref, wfc3_ref, bfc3_ref,
                  o_ref):
    f32 = jnp.float32
    a0 = x_ref[0]                                                 # (32, 96)

    # ---- conv1: 5 shifted GEMMs ----------------------------------------
    out1 = jnp.dot(a0[0:28, :], t1_ref[0], preferred_element_type=f32)
    for dh in range(1, 5):
        out1 = out1 + jnp.dot(a0[dh:dh + 28, :], t1_ref[dh],
                              preferred_element_type=f32)         # (28, 168)

    # ---- maxpool 2x2 + bias + relu (fused epilogue) ----------------------
    rp1 = jnp.maximum(
        jnp.dot(rsel1_ref[0], out1, preferred_element_type=f32),
        jnp.dot(rsel1_ref[1], out1, preferred_element_type=f32))  # (14, 168)
    cp1 = jnp.maximum(rp1[:, :162], rp1[:, 6:])                   # (14, 162)
    p1 = jnp.maximum(cp1 + b1_ref[...], 0.0)

    # ---- conv2 (pool1 column compaction folded into t2's zero rows) ------
    out2 = jnp.dot(p1[0:10, :], t2_ref[0], preferred_element_type=f32)
    for dh in range(1, 5):
        out2 = out2 + jnp.dot(p1[dh:dh + 10, :], t2_ref[dh],
                              preferred_element_type=f32)         # (10, 160)

    rp2 = jnp.maximum(
        jnp.dot(rsel2_ref[0], out2, preferred_element_type=f32),
        jnp.dot(rsel2_ref[1], out2, preferred_element_type=f32))  # (5, 160)
    cp2 = jnp.maximum(rp2[:, :144], rp2[:, 16:])                  # (5, 144)
    p2 = jnp.maximum(cp2 + b2_ref[...], 0.0)

    # ---- fc1 (NCHW flatten + pool2 column gather folded into wfc1) -------
    h = bfc1_ref[...]                                             # (1, 120)
    for hp in range(5):
        h = h + jnp.dot(p2[hp:hp + 1, :], wfc1_ref[hp],
                        preferred_element_type=f32)
    h = jnp.maximum(h, 0.0)

    # ---- fc2 / fc3 --------------------------------------------------------
    h = jnp.maximum(jnp.dot(h, wfc2_ref[...], preferred_element_type=f32)
                    + bfc2_ref[...], 0.0)                         # (1, 84)
    o_ref[0] = (jnp.dot(h, wfc3_ref[...], preferred_element_type=f32)
                + bfc3_ref[...]).astype(o_ref.dtype)              # (1, 10)


# -------------------- one-time host-side weight transforms ------------------

def _toeplitz_weights(w_oihw, w_out, row_stride, n_rows):
    """(Cout,Cin,k,k) -> (k, n_rows, w_out*Cout) with
       T[dh, w*row_stride + ci, wo*Cout + co] = w[co, ci, dh, w - wo]."""
    w = np.asarray(w_oihw, np.float32)
    cout, cin, k, _ = w.shape
    t = np.zeros((k, n_rows, w_out * cout), np.float32)
    for dh in range(k):
        for dw in range(k):
            blk = w[:, :, dh, dw].T                       # (cin, cout)
            for wo in range(w_out):
                r0 = (wo + dw) * row_stride
                t[dh, r0:r0 + cin, wo * cout:(wo + 1) * cout] = blk
    return jnp.asarray(t)


def _pool_row_selectors(n):
    """(2, n//2, n): [0] picks even rows, [1] picks odd rows."""
    eye = np.eye(n, dtype=np.float32)
    return jnp.asarray(np.stack([eye[0::2], eye[1::2]], axis=0))


def _fold_fc1(fc1_w):
    """fc1_w (120,400) with torch flatten index co*25+hp*5+wp ->
       (5, 144, 120) matching P2's (hp rows, 32*wp+co cols) layout."""
    w4 = np.asarray(fc1_w, np.float32).reshape(120, 16, 5, 5)   # [j, co, hp, wp]
    out = np.zeros((5, 144, 120), np.float32)
    for hp in range(5):
        for wp in range(5):
            out[hp, 32 * wp:32 * wp + 16, :] = w4[:, :, hp, wp].T
    return jnp.asarray(out)


def prepare_params(p):
    """PyTorch-shaped params -> kernel-ready operands (done once, off the hot path)."""
    return {
        "t1": _toeplitz_weights(p["conv1_w"], w_out=28, row_stride=3, n_rows=96),
        "b1": jnp.tile(p["conv1_b"], 27).reshape(1, 162).astype(jnp.float32),
        "rsel1": _pool_row_selectors(28),
        "t2": _toeplitz_weights(p["conv2_w"], w_out=10, row_stride=12, n_rows=162),
        "b2": jnp.tile(p["conv2_b"], 9).reshape(1, 144).astype(jnp.float32),
        "rsel2": _pool_row_selectors(10),
        "wfc1": _fold_fc1(p["fc1_w"]),
        "bfc1": p["fc1_b"].reshape(1, 120).astype(jnp.float32),
        "wfc2": jnp.asarray(p["fc2_w"]).T.astype(jnp.float32),   # (120, 84)
        "bfc2": p["fc2_b"].reshape(1, 84).astype(jnp.float32),
        "wfc3": jnp.asarray(p["fc3_w"]).T.astype(jnp.float32),   # (84, 10)
        "bfc3": p["fc3_b"].reshape(1, 10).astype(jnp.float32),
    }


# ------------------------------- forward pass -------------------------------

@jax.jit
def lenet_forward(x_nchw, prep):
    n = x_nchw.shape[0]
    x = jnp.transpose(x_nchw, (0, 2, 3, 1)).reshape(n, 32, 96)   # NCHW -> (N,32,W*C)
    const3 = lambda i: (0, 0, 0)
    const2 = lambda i: (0, 0)
    out = pl.pallas_call(
        _lenet_kernel,
        out_shape=jax.ShapeDtypeStruct((n, 1, 10), jnp.float32),
        grid=(n,),
        in_specs=[
            pl.BlockSpec((1, 32, 96), lambda i: (i, 0, 0)),      # image
            pl.BlockSpec((5, 96, 168), const3),                  # t1
            pl.BlockSpec((1, 162), const2),                      # b1
            pl.BlockSpec((2, 14, 28), const3),                   # rsel1
            pl.BlockSpec((5, 162, 160), const3),                 # t2
            pl.BlockSpec((1, 144), const2),                      # b2
            pl.BlockSpec((2, 5, 10), const3),                    # rsel2
            pl.BlockSpec((5, 144, 120), const3),                 # wfc1
            pl.BlockSpec((1, 120), const2),                      # bfc1
            pl.BlockSpec((120, 84), const2),                     # wfc2
            pl.BlockSpec((1, 84), const2),                       # bfc2
            pl.BlockSpec((84, 10), const2),                      # wfc3
            pl.BlockSpec((1, 10), const2),                       # bfc3
        ],
        out_specs=pl.BlockSpec((1, 1, 10), lambda i: (i, 0, 0)),
        compiler_params=pltpu.CompilerParams(
            dimension_semantics=("parallel",)),                  # megacore on v7x
    )(x, prep["t1"], prep["b1"], prep["rsel1"], prep["t2"], prep["b2"],
      prep["rsel2"], prep["wfc1"], prep["bfc1"], prep["wfc2"], prep["bfc2"],
      prep["wfc3"], prep["bfc3"])
    return out.reshape(n, 10)


# ------------------------------ params & check ------------------------------

def init_params():
    """Deterministic synthetic parameters with PyTorch LeNet shapes."""
    key = jax.random.PRNGKey(42)
    ks = jax.random.split(key, 10)

    def w(k, shape, fan_in):
        return (jax.random.normal(k, shape, jnp.float32)
                / jnp.sqrt(jnp.float32(fan_in))).astype(jnp.float32)

    return {
        "conv1_w": w(ks[0], (6, 3, 5, 5), 3 * 5 * 5),
        "conv1_b": w(ks[1], (6,), 3 * 5 * 5),
        "conv2_w": w(ks[2], (16, 6, 5, 5), 6 * 5 * 5),
        "conv2_b": w(ks[3], (16,), 6 * 5 * 5),
        "fc1_w":   w(ks[4], (120, 400), 400),
        "fc1_b":   w(ks[5], (120,), 400),
        "fc2_w":   w(ks[6], (84, 120), 120),
        "fc2_b":   w(ks[7], (84,), 120),
        "fc3_w":   w(ks[8], (10, 84), 84),
        "fc3_b":   w(ks[9], (10,), 84),
    }


def _torch_style_reference(x_nchw, p):
    """Pure-JAX/XLA reference matching the PyTorch module semantics."""
    def conv(x, w, b):
        y = jax.lax.conv_general_dilated(
            x, w, window_strides=(1, 1), padding="VALID",
            dimension_numbers=("NCHW", "OIHW", "NCHW"),
            precision=jax.lax.Precision.HIGHEST)
        return jax.nn.relu(y + b[None, :, None, None])

    def pool(x):
        n, c, h, w = x.shape
        return x.reshape(n, c, h // 2, 2, w // 2, 2).max(axis=(3, 5))

    y = pool(conv(x_nchw, p["conv1_w"], p["conv1_b"]))
    y = pool(conv(y, p["conv2_w"], p["conv2_b"]))
    y = y.reshape(y.shape[0], -1)
    y = jax.nn.relu(y @ p["fc1_w"].T + p["fc1_b"])
    y = jax.nn.relu(y @ p["fc2_w"].T + p["fc2_b"])
    return y @ p["fc3_w"].T + p["fc3_b"]


if __name__ == "__main__":
    key = jax.random.PRNGKey(0)
    # LeNet's 16*5*5 flatten implies 3x32x32 inputs; batch=2.
    x = jax.random.normal(key, (2, 3, 32, 32), jnp.float32)
    params = init_params()
    prep = prepare_params(params)

    out = lenet_forward(x, prep)
    out = jax.block_until_ready(out)
    assert out.shape == (2, 10) and out.dtype == jnp.float32

    ref = jax.block_until_ready(jax.jit(_torch_style_reference)(x, params))
    max_err = float(jnp.max(jnp.abs(out - ref)))
    assert max_err < 5e-2, f"mismatch vs reference: max_err={max_err}"
    print("KERNEL_OK")
</pallas_src>

<mosaic_0001>
module attributes {stable_mosaic.version = 11 : i64} {
  func.func @_lenet_kernel(%arg0: i32, %arg1: memref<1x32x96xf32, #tpu.memory_space<vmem>>, %arg2: memref<5x96x168xf32, #tpu.memory_space<vmem>>, %arg3: memref<1x162xf32, #tpu.memory_space<vmem>>, %arg4: memref<2x14x28xf32, #tpu.memory_space<vmem>>, %arg5: memref<5x162x160xf32, #tpu.memory_space<vmem>>, %arg6: memref<1x144xf32, #tpu.memory_space<vmem>>, %arg7: memref<2x5x10xf32, #tpu.memory_space<vmem>>, %arg8: memref<5x144x120xf32, #tpu.memory_space<vmem>>, %arg9: memref<1x120xf32, #tpu.memory_space<vmem>>, %arg10: memref<120x84xf32, #tpu.memory_space<vmem>>, %arg11: memref<1x84xf32, #tpu.memory_space<vmem>>, %arg12: memref<84x10xf32, #tpu.memory_space<vmem>>, %arg13: memref<1x10xf32, #tpu.memory_space<vmem>>, %arg14: memref<1x1x10xf32, #tpu.memory_space<vmem>>) attributes {dimension_semantics = [#tpu.dimension_semantics<parallel>], iteration_bounds = array<i64: 2>, scalar_prefetch = 0 : i64, scratch_operands = 0 : i64, tpu.core_type = #tpu.core_type<tc>, window_params = [{transform_indices = @transform_0, window_bounds = array<i64: 1, 32, 96>}, {pipeline_mode = #tpu.pipeline_mode<synchronous>, transform_indices = @transform_1, window_bounds = array<i64: 5, 96, 168>}, {pipeline_mode = #tpu.pipeline_mode<synchronous>, transform_indices = @transform_2, window_bounds = array<i64: 1, 162>}, {pipeline_mode = #tpu.pipeline_mode<synchronous>, transform_indices = @transform_3, window_bounds = array<i64: 2, 14, 28>}, {pipeline_mode = #tpu.pipeline_mode<synchronous>, transform_indices = @transform_4, window_bounds = array<i64: 5, 162, 160>}, {pipeline_mode = #tpu.pipeline_mode<synchronous>, transform_indices = @transform_5, window_bounds = array<i64: 1, 144>}, {pipeline_mode = #tpu.pipeline_mode<synchronous>, transform_indices = @transform_6, window_bounds = array<i64: 2, 5, 10>}, {pipeline_mode = #tpu.pipeline_mode<synchronous>, transform_indices = @transform_7, window_bounds = array<i64: 5, 144, 120>}, {pipeline_mode = #tpu.pipeline_mode<synchronous>, transform_indices = @transform_8, window_bounds = array<i64: 1, 120>}, {pipeline_mode = #tpu.pipeline_mode<synchronous>, transform_indices = @transform_9, window_bounds = array<i64: 120, 84>}, {pipeline_mode = #tpu.pipeline_mode<synchronous>, transform_indices = @transform_10, window_bounds = array<i64: 1, 84>}, {pipeline_mode = #tpu.pipeline_mode<synchronous>, transform_indices = @transform_11, window_bounds = array<i64: 84, 10>}, {pipeline_mode = #tpu.pipeline_mode<synchronous>, transform_indices = @transform_12, window_bounds = array<i64: 1, 10>}, {transform_indices = @transform_13, window_bounds = array<i64: 1, 1, 10>}]} {
    %c0 = arith.constant 0 : index
    %c0_0 = arith.constant 0 : index
    %c0_1 = arith.constant 0 : index
    %0 = vector.load %arg1[%c0, %c0_0, %c0_1] : memref<1x32x96xf32, #tpu.memory_space<vmem>>, vector<1x32x96xf32>
    %1 = vector.shape_cast %0 : vector<1x32x96xf32> to vector<32x96xf32>
    %2 = vector.extract_strided_slice %1 {offsets = [0, 0], sizes = [28, 96], strides = [1, 1]} : vector<32x96xf32> to vector<28x96xf32>
    %c0_2 = arith.constant 0 : index
    %c0_3 = arith.constant 0 : index
    %c0_4 = arith.constant 0 : index
    %3 = vector.load %arg2[%c0_2, %c0_3, %c0_4] : memref<5x96x168xf32, #tpu.memory_space<vmem>>, vector<1x96x168xf32>
    %4 = vector.shape_cast %3 : vector<1x96x168xf32> to vector<96x168xf32>
    %cst = arith.constant dense<0.000000e+00> : vector<28x168xf32>
    %5 = tpu.matmul %2, %4, %cst {dimension_numbers = #tpu.dot_dimension_numbers<[1], [0], [0], [1], [0, 0, 1, 1], [], []>} : vector<28x96xf32>, vector<96x168xf32>, vector<28x168xf32> -> vector<28x168xf32>
    %6 = vector.extract_strided_slice %1 {offsets = [1, 0], sizes = [28, 96], strides = [1, 1]} : vector<32x96xf32> to vector<28x96xf32>
    %c1 = arith.constant 1 : index
    %c0_5 = arith.constant 0 : index
    %c0_6 = arith.constant 0 : index
    %7 = vector.load %arg2[%c1, %c0_5, %c0_6] : memref<5x96x168xf32, #tpu.memory_space<vmem>>, vector<1x96x168xf32>
    %8 = vector.shape_cast %7 : vector<1x96x168xf32> to vector<96x168xf32>
    %cst_7 = arith.constant dense<0.000000e+00> : vector<28x168xf32>
    %9 = tpu.matmul %6, %8, %cst_7 {dimension_numbers = #tpu.dot_dimension_numbers<[1], [0], [0], [1], [0, 0, 1, 1], [], []>} : vector<28x96xf32>, vector<96x168xf32>, vector<28x168xf32> -> vector<28x168xf32>
    %10 = arith.addf %5, %9 : vector<28x168xf32>
    %11 = vector.extract_strided_slice %1 {offsets = [2, 0], sizes = [28, 96], strides = [1, 1]} : vector<32x96xf32> to vector<28x96xf32>
    %c2 = arith.constant 2 : index
    %c0_8 = arith.constant 0 : index
    %c0_9 = arith.constant 0 : index
    %12 = vector.load %arg2[%c2, %c0_8, %c0_9] : memref<5x96x168xf32, #tpu.memory_space<vmem>>, vector<1x96x168xf32>
    %13 = vector.shape_cast %12 : vector<1x96x168xf32> to vector<96x168xf32>
    %cst_10 = arith.constant dense<0.000000e+00> : vector<28x168xf32>
    %14 = tpu.matmul %11, %13, %cst_10 {dimension_numbers = #tpu.dot_dimension_numbers<[1], [0], [0], [1], [0, 0, 1, 1], [], []>} : vector<28x96xf32>, vector<96x168xf32>, vector<28x168xf32> -> vector<28x168xf32>
    %15 = arith.addf %10, %14 : vector<28x168xf32>
    %16 = vector.extract_strided_slice %1 {offsets = [3, 0], sizes = [28, 96], strides = [1, 1]} : vector<32x96xf32> to vector<28x96xf32>
    %c3 = arith.constant 3 : index
    %c0_11 = arith.constant 0 : index
    %c0_12 = arith.constant 0 : index
    %17 = vector.load %arg2[%c3, %c0_11, %c0_12] : memref<5x96x168xf32, #tpu.memory_space<vmem>>, vector<1x96x168xf32>
    %18 = vector.shape_cast %17 : vector<1x96x168xf32> to vector<96x168xf32>
    %cst_13 = arith.constant dense<0.000000e+00> : vector<28x168xf32>
    %19 = tpu.matmul %16, %18, %cst_13 {dimension_numbers = #tpu.dot_dimension_numbers<[1], [0], [0], [1], [0, 0, 1, 1], [], []>} : vector<28x96xf32>, vector<96x168xf32>, vector<28x168xf32> -> vector<28x168xf32>
    %20 = arith.addf %15, %19 : vector<28x168xf32>
    %21 = vector.extract_strided_slice %1 {offsets = [4, 0], sizes = [28, 96], strides = [1, 1]} : vector<32x96xf32> to vector<28x96xf32>
    %c4 = arith.constant 4 : index
    %c0_14 = arith.constant 0 : index
    %c0_15 = arith.constant 0 : index
    %22 = vector.load %arg2[%c4, %c0_14, %c0_15] : memref<5x96x168xf32, #tpu.memory_space<vmem>>, vector<1x96x168xf32>
    %23 = vector.shape_cast %22 : vector<1x96x168xf32> to vector<96x168xf32>
    %cst_16 = arith.constant dense<0.000000e+00> : vector<28x168xf32>
    %24 = tpu.matmul %21, %23, %cst_16 {dimension_numbers = #tpu.dot_dimension_numbers<[1], [0], [0], [1], [0, 0, 1, 1], [], []>} : vector<28x96xf32>, vector<96x168xf32>, vector<28x168xf32> -> vector<28x168xf32>
    %25 = arith.addf %20, %24 : vector<28x168xf32>
    %c0_17 = arith.constant 0 : index
    %c0_18 = arith.constant 0 : index
    %c0_19 = arith.constant 0 : index
    %26 = vector.load %arg4[%c0_17, %c0_18, %c0_19] : memref<2x14x28xf32, #tpu.memory_space<vmem>>, vector<1x14x28xf32>
    %27 = vector.shape_cast %26 : vector<1x14x28xf32> to vector<14x28xf32>
    %cst_20 = arith.constant dense<0.000000e+00> : vector<14x168xf32>
    %28 = tpu.matmul %27, %25, %cst_20 {dimension_numbers = #tpu.dot_dimension_numbers<[1], [0], [0], [1], [0, 0, 1, 1], [], []>} : vector<14x28xf32>, vector<28x168xf32>, vector<14x168xf32> -> vector<14x168xf32>
    %c1_21 = arith.constant 1 : index
    %c0_22 = arith.constant 0 : index
    %c0_23 = arith.constant 0 : index
    %29 = vector.load %arg4[%c1_21, %c0_22, %c0_23] : memref<2x14x28xf32, #tpu.memory_space<vmem>>, vector<1x14x28xf32>
    %30 = vector.shape_cast %29 : vector<1x14x28xf32> to vector<14x28xf32>
    %cst_24 = arith.constant dense<0.000000e+00> : vector<14x168xf32>
    %31 = tpu.matmul %30, %25, %cst_24 {dimension_numbers = #tpu.dot_dimension_numbers<[1], [0], [0], [1], [0, 0, 1, 1], [], []>} : vector<14x28xf32>, vector<28x168xf32>, vector<14x168xf32> -> vector<14x168xf32>
    %32 = arith.maximumf %28, %31 : vector<14x168xf32>
    %33 = vector.extract_strided_slice %32 {offsets = [0, 0], sizes = [14, 162], strides = [1, 1]} : vector<14x168xf32> to vector<14x162xf32>
    %34 = vector.extract_strided_slice %32 {offsets = [0, 6], sizes = [14, 162], strides = [1, 1]} : vector<14x168xf32> to vector<14x162xf32>
    %35 = arith.maximumf %33, %34 : vector<14x162xf32>
    %c0_25 = arith.constant 0 : index
    %c0_26 = arith.constant 0 : index
    %36 = vector.load %arg3[%c0_25, %c0_26] : memref<1x162xf32, #tpu.memory_space<vmem>>, vector<1x162xf32>
    %37 = vector.broadcast %36 : vector<1x162xf32> to vector<14x162xf32>
    %38 = arith.addf %35, %37 : vector<14x162xf32>
    %cst_27 = arith.constant 0.000000e+00 : f32
    %39 = vector.broadcast %cst_27 : f32 to vector<14x162xf32>
    %40 = arith.maximumf %38, %39 : vector<14x162xf32>
    %41 = vector.extract_strided_slice %40 {offsets = [0, 0], sizes = [10, 162], strides = [1, 1]} : vector<14x162xf32> to vector<10x162xf32>
    %c0_28 = arith.constant 0 : index
    %c0_29 = arith.constant 0 : index
    %c0_30 = arith.constant 0 : index
    %42 = vector.load %arg5[%c0_28, %c0_29, %c0_30] : memref<5x162x160xf32, #tpu.memory_space<vmem>>, vector<1x162x160xf32>
    %43 = vector.shape_cast %42 : vector<1x162x160xf32> to vector<162x160xf32>
    %cst_31 = arith.constant dense<0.000000e+00> : vector<10x160xf32>
    %44 = tpu.matmul %41, %43, %cst_31 {dimension_numbers = #tpu.dot_dimension_numbers<[1], [0], [0], [1], [0, 0, 1, 1], [], []>} : vector<10x162xf32>, vector<162x160xf32>, vector<10x160xf32> -> vector<10x160xf32>
    %45 = vector.extract_strided_slice %40 {offsets = [1, 0], sizes = [10, 162], strides = [1, 1]} : vector<14x162xf32> to vector<10x162xf32>
    %c1_32 = arith.constant 1 : index
    %c0_33 = arith.constant 0 : index
    %c0_34 = arith.constant 0 : index
    %46 = vector.load %arg5[%c1_32, %c0_33, %c0_34] : memref<5x162x160xf32, #tpu.memory_space<vmem>>, vector<1x162x160xf32>
    %47 = vector.shape_cast %46 : vector<1x162x160xf32> to vector<162x160xf32>
    %cst_35 = arith.constant dense<0.000000e+00> : vector<10x160xf32>
    %48 = tpu.matmul %45, %47, %cst_35 {dimension_numbers = #tpu.dot_dimension_numbers<[1], [0], [0], [1], [0, 0, 1, 1], [], []>} : vector<10x162xf32>, vector<162x160xf32>, vector<10x160xf32> -> vector<10x160xf32>
    %49 = arith.addf %44, %48 : vector<10x160xf32>
    %50 = vector.extract_strided_slice %40 {offsets = [2, 0], sizes = [10, 162], strides = [1, 1]} : vector<14x162xf32> to vector<10x162xf32>
    %c2_36 = arith.constant 2 : index
    %c0_37 = arith.constant 0 : index
    %c0_38 = arith.constant 0 : index
    %51 = vector.load %arg5[%c2_36, %c0_37, %c0_38] : memref<5x162x160xf32, #tpu.memory_space<vmem>>, vector<1x162x160xf32>
    %52 = vector.shape_cast %51 : vector<1x162x160xf32> to vector<162x160xf32>
    %cst_39 = arith.constant dense<0.000000e+00> : vector<10x160xf32>
    %53 = tpu.matmul %50, %52, %cst_39 {dimension_numbers = #tpu.dot_dimension_numbers<[1], [0], [0], [1], [0, 0, 1, 1], [], []>} : vector<10x162xf32>, vector<162x160xf32>, vector<10x160xf32> -> vector<10x160xf32>
    %54 = arith.addf %49, %53 : vector<10x160xf32>
    %55 = vector.extract_strided_slice %40 {offsets = [3, 0], sizes = [10, 162], strides = [1, 1]} : vector<14x162xf32> to vector<10x162xf32>
    %c3_40 = arith.constant 3 : index
    %c0_41 = arith.constant 0 : index
    %c0_42 = arith.constant 0 : index
    %56 = vector.load %arg5[%c3_40, %c0_41, %c0_42] : memref<5x162x160xf32, #tpu.memory_space<vmem>>, vector<1x162x160xf32>
    %57 = vector.shape_cast %56 : vector<1x162x160xf32> to vector<162x160xf32>
    %cst_43 = arith.constant dense<0.000000e+00> : vector<10x160xf32>
    %58 = tpu.matmul %55, %57, %cst_43 {dimension_numbers = #tpu.dot_dimension_numbers<[1], [0], [0], [1], [0, 0, 1, 1], [], []>} : vector<10x162xf32>, vector<162x160xf32>, vector<10x160xf32> -> vector<10x160xf32>
    %59 = arith.addf %54, %58 : vector<10x160xf32>
    %60 = vector.extract_strided_slice %40 {offsets = [4, 0], sizes = [10, 162], strides = [1, 1]} : vector<14x162xf32> to vector<10x162xf32>
    %c4_44 = arith.constant 4 : index
    %c0_45 = arith.constant 0 : index
    %c0_46 = arith.constant 0 : index
    %61 = vector.load %arg5[%c4_44, %c0_45, %c0_46] : memref<5x162x160xf32, #tpu.memory_space<vmem>>, vector<1x162x160xf32>
    %62 = vector.shape_cast %61 : vector<1x162x160xf32> to vector<162x160xf32>
    %cst_47 = arith.constant dense<0.000000e+00> : vector<10x160xf32>
    %63 = tpu.matmul %60, %62, %cst_47 {dimension_numbers = #tpu.dot_dimension_numbers<[1], [0], [0], [1], [0, 0, 1, 1], [], []>} : vector<10x162xf32>, vector<162x160xf32>, vector<10x160xf32> -> vector<10x160xf32>
    %64 = arith.addf %59, %63 : vector<10x160xf32>
    %c0_48 = arith.constant 0 : index
    %c0_49 = arith.constant 0 : index
    %c0_50 = arith.constant 0 : index
    %65 = vector.load %arg7[%c0_48, %c0_49, %c0_50] : memref<2x5x10xf32, #tpu.memory_space<vmem>>, vector<1x5x10xf32>
    %66 = vector.shape_cast %65 : vector<1x5x10xf32> to vector<5x10xf32>
    %cst_51 = arith.constant dense<0.000000e+00> : vector<5x160xf32>
    %67 = tpu.matmul %66, %64, %cst_51 {dimension_numbers = #tpu.dot_dimension_numbers<[1], [0], [0], [1], [0, 0, 1, 1], [], []>} : vector<5x10xf32>, vector<10x160xf32>, vector<5x160xf32> -> vector<5x160xf32>
    %c1_52 = arith.constant 1 : index
    %c0_53 = arith.constant 0 : index
    %c0_54 = arith.constant 0 : index
    %68 = vector.load %arg7[%c1_52, %c0_53, %c0_54] : memref<2x5x10xf32, #tpu.memory_space<vmem>>, vector<1x5x10xf32>
    %69 = vector.shape_cast %68 : vector<1x5x10xf32> to vector<5x10xf32>
    %cst_55 = arith.constant dense<0.000000e+00> : vector<5x160xf32>
    %70 = tpu.matmul %69, %64, %cst_55 {dimension_numbers = #tpu.dot_dimension_numbers<[1], [0], [0], [1], [0, 0, 1, 1], [], []>} : vector<5x10xf32>, vector<10x160xf32>, vector<5x160xf32> -> vector<5x160xf32>
    %71 = arith.maximumf %67, %70 : vector<5x160xf32>
    %72 = vector.extract_strided_slice %71 {offsets = [0, 0], sizes = [5, 144], strides = [1, 1]} : vector<5x160xf32> to vector<5x144xf32>
    %73 = vector.extract_strided_slice %71 {offsets = [0, 16], sizes = [5, 144], strides = [1, 1]} : vector<5x160xf32> to vector<5x144xf32>
    %74 = arith.maximumf %72, %73 : vector<5x144xf32>
    %c0_56 = arith.constant 0 : index
    %c0_57 = arith.constant 0 : index
    %75 = vector.load %arg6[%c0_56, %c0_57] : memref<1x144xf32, #tpu.memory_space<vmem>>, vector<1x144xf32>
    %76 = vector.broadcast %75 : vector<1x144xf32> to vector<5x144xf32>
    %77 = arith.addf %74, %76 : vector<5x144xf32>
    %cst_58 = arith.constant 0.000000e+00 : f32
    %78 = vector.broadcast %cst_58 : f32 to vector<5x144xf32>
    %79 = arith.maximumf %77, %78 : vector<5x144xf32>
    %c0_59 = arith.constant 0 : index
    %c0_60 = arith.constant 0 : index
    %80 = vector.load %arg9[%c0_59, %c0_60] : memref<1x120xf32, #tpu.memory_space<vmem>>, vector<1x120xf32>
    %81 = vector.extract_strided_slice %79 {offsets = [0, 0], sizes = [1, 144], strides = [1, 1]} : vector<5x144xf32> to vector<1x144xf32>
    %c0_61 = arith.constant 0 : index
    %c0_62 = arith.constant 0 : index
    %c0_63 = arith.constant 0 : index
    %82 = vector.load %arg8[%c0_61, %c0_62, %c0_63] : memref<5x144x120xf32, #tpu.memory_space<vmem>>, vector<1x144x120xf32>
    %83 = vector.shape_cast %82 : vector<1x144x120xf32> to vector<144x120xf32>
    %cst_64 = arith.constant dense<0.000000e+00> : vector<1x120xf32>
    %84 = tpu.matmul %81, %83, %cst_64 {dimension_numbers = #tpu.dot_dimension_numbers<[1], [0], [0], [1], [0, 0, 1, 1], [], []>} : vector<1x144xf32>, vector<144x120xf32>, vector<1x120xf32> -> vector<1x120xf32>
    %85 = arith.addf %80, %84 : vector<1x120xf32>
    %86 = vector.extract_strided_slice %79 {offsets = [1, 0], sizes = [1, 144], strides = [1, 1]} : vector<5x144xf32> to vector<1x144xf32>
    %c1_65 = arith.constant 1 : index
    %c0_66 = arith.constant 0 : index
    %c0_67 = arith.constant 0 : index
    %87 = vector.load %arg8[%c1_65, %c0_66, %c0_67] : memref<5x144x120xf32, #tpu.memory_space<vmem>>, vector<1x144x120xf32>
    %88 = vector.shape_cast %87 : vector<1x144x120xf32> to vector<144x120xf32>
    %cst_68 = arith.constant dense<0.000000e+00> : vector<1x120xf32>
    %89 = tpu.matmul %86, %88, %cst_68 {dimension_numbers = #tpu.dot_dimension_numbers<[1], [0], [0], [1], [0, 0, 1, 1], [], []>} : vector<1x144xf32>, vector<144x120xf32>, vector<1x120xf32> -> vector<1x120xf32>
    %90 = arith.addf %85, %89 : vector<1x120xf32>
    %91 = vector.extract_strided_slice %79 {offsets = [2, 0], sizes = [1, 144], strides = [1, 1]} : vector<5x144xf32> to vector<1x144xf32>
    %c2_69 = arith.constant 2 : index
    %c0_70 = arith.constant 0 : index
    %c0_71 = arith.constant 0 : index
    %92 = vector.load %arg8[%c2_69, %c0_70, %c0_71] : memref<5x144x120xf32, #tpu.memory_space<vmem>>, vector<1x144x120xf32>
    %93 = vector.shape_cast %92 : vector<1x144x120xf32> to vector<144x120xf32>
    %cst_72 = arith.constant dense<0.000000e+00> : vector<1x120xf32>
    %94 = tpu.matmul %91, %93, %cst_72 {dimension_numbers = #tpu.dot_dimension_numbers<[1], [0], [0], [1], [0, 0, 1, 1], [], []>} : vector<1x144xf32>, vector<144x120xf32>, vector<1x120xf32> -> vector<1x120xf32>
    %95 = arith.addf %90, %94 : vector<1x120xf32>
    %96 = vector.extract_strided_slice %79 {offsets = [3, 0], sizes = [1, 144], strides = [1, 1]} : vector<5x144xf32> to vector<1x144xf32>
    %c3_73 = arith.constant 3 : index
    %c0_74 = arith.constant 0 : index
    %c0_75 = arith.constant 0 : index
    %97 = vector.load %arg8[%c3_73, %c0_74, %c0_75] : memref<5x144x120xf32, #tpu.memory_space<vmem>>, vector<1x144x120xf32>
    %98 = vector.shape_cast %97 : vector<1x144x120xf32> to vector<144x120xf32>
    %cst_76 = arith.constant dense<0.000000e+00> : vector<1x120xf32>
    %99 = tpu.matmul %96, %98, %cst_76 {dimension_numbers = #tpu.dot_dimension_numbers<[1], [0], [0], [1], [0, 0, 1, 1], [], []>} : vector<1x144xf32>, vector<144x120xf32>, vector<1x120xf32> -> vector<1x120xf32>
    %100 = arith.addf %95, %99 : vector<1x120xf32>
    %101 = vector.extract_strided_slice %79 {offsets = [4, 0], sizes = [1, 144], strides = [1, 1]} : vector<5x144xf32> to vector<1x144xf32>
    %c4_77 = arith.constant 4 : index
    %c0_78 = arith.constant 0 : index
    %c0_79 = arith.constant 0 : index
    %102 = vector.load %arg8[%c4_77, %c0_78, %c0_79] : memref<5x144x120xf32, #tpu.memory_space<vmem>>, vector<1x144x120xf32>
    %103 = vector.shape_cast %102 : vector<1x144x120xf32> to vector<144x120xf32>
    %cst_80 = arith.constant dense<0.000000e+00> : vector<1x120xf32>
    %104 = tpu.matmul %101, %103, %cst_80 {dimension_numbers = #tpu.dot_dimension_numbers<[1], [0], [0], [1], [0, 0, 1, 1], [], []>} : vector<1x144xf32>, vector<144x120xf32>, vector<1x120xf32> -> vector<1x120xf32>
    %105 = arith.addf %100, %104 : vector<1x120xf32>
    %cst_81 = arith.constant 0.000000e+00 : f32
    %106 = vector.broadcast %cst_81 : f32 to vector<1x120xf32>
    %107 = arith.maximumf %105, %106 : vector<1x120xf32>
    %c0_82 = arith.constant 0 : index
    %c0_83 = arith.constant 0 : index
    %108 = vector.load %arg10[%c0_82, %c0_83] : memref<120x84xf32, #tpu.memory_space<vmem>>, vector<120x84xf32>
    %cst_84 = arith.constant dense<0.000000e+00> : vector<1x84xf32>
    %109 = tpu.matmul %107, %108, %cst_84 {dimension_numbers = #tpu.dot_dimension_numbers<[1], [0], [0], [1], [0, 0, 1, 1], [], []>} : vector<1x120xf32>, vector<120x84xf32>, vector<1x84xf32> -> vector<1x84xf32>
    %c0_85 = arith.constant 0 : index
    %c0_86 = arith.constant 0 : index
    %110 = vector.load %arg11[%c0_85, %c0_86] : memref<1x84xf32, #tpu.memory_space<vmem>>, vector<1x84xf32>
    %111 = arith.addf %109, %110 : vector<1x84xf32>
    %cst_87 = arith.constant 0.000000e+00 : f32
    %112 = vector.broadcast %cst_87 : f32 to vector<1x84xf32>
    %113 = arith.maximumf %111, %112 : vector<1x84xf32>
    %c0_88 = arith.constant 0 : index
    %c0_89 = arith.constant 0 : index
    %114 = vector.load %arg12[%c0_88, %c0_89] : memref<84x10xf32, #tpu.memory_space<vmem>>, vector<84x10xf32>
    %cst_90 = arith.constant dense<0.000000e+00> : vector<1x10xf32>
    %115 = tpu.matmul %113, %114, %cst_90 {dimension_numbers = #tpu.dot_dimension_numbers<[1], [0], [0], [1], [0, 0, 1, 1], [], []>} : vector<1x84xf32>, vector<84x10xf32>, vector<1x10xf32> -> vector<1x10xf32>
    %c0_91 = arith.constant 0 : index
    %c0_92 = arith.constant 0 : index
    %116 = vector.load %arg13[%c0_91, %c0_92] : memref<1x10xf32, #tpu.memory_space<vmem>>, vector<1x10xf32>
    %117 = arith.addf %115, %116 : vector<1x10xf32>
    %c0_93 = arith.constant 0 : index
    %c0_94 = arith.constant 0 : index
    %c0_95 = arith.constant 0 : index
    %118 = vector.load %arg14[%c0_93, %c0_94, %c0_95] : memref<1x1x10xf32, #tpu.memory_space<vmem>>, vector<1x1x10xf32>
    %119 = vector.shape_cast %118 : vector<1x1x10xf32> to vector<1x10xf32>
    %120 = vector.shape_cast %117 : vector<1x10xf32> to vector<1x1x10xf32>
    tpu.vector_store %arg14[%c0_93, %c0_94, %c0_95], %120 {strides = array<i32>} : memref<1x1x10xf32, #tpu.memory_space<vmem>>, vector<1x1x10xf32>,
    return
  }
  func.func @transform_0(%arg0: i32) -> (i32, i32, i32) {
    %c0_i32 = arith.constant 0 : i32
    %c0_i32_0 = arith.constant 0 : i32
    %c0_i32_1 = arith.constant 0 : i32
    return %arg0, %c0_i32, %c0_i32_0 : i32, i32, i32
  }
  func.func @transform_1(%arg0: i32) -> (i32, i32, i32) {
    %c0_i32 = arith.constant 0 : i32
    %c0_i32_0 = arith.constant 0 : i32
    %c0_i32_1 = arith.constant 0 : i32
    %c0_i32_2 = arith.constant 0 : i32
    return %c0_i32, %c0_i32_0, %c0_i32_1 : i32, i32, i32
  }
  func.func @transform_2(%arg0: i32) -> (i32, i32) {
    %c0_i32 = arith.constant 0 : i32
    %c0_i32_0 = arith.constant 0 : i32
    %c0_i32_1 = arith.constant 0 : i32
    return %c0_i32, %c0_i32_0 : i32, i32
  }
  func.func @transform_3(%arg0: i32) -> (i32, i32, i32) {
    %c0_i32 = arith.constant 0 : i32
    %c0_i32_0 = arith.constant 0 : i32
    %c0_i32_1 = arith.constant 0 : i32
    %c0_i32_2 = arith.constant 0 : i32
    return %c0_i32, %c0_i32_0, %c0_i32_1 : i32, i32, i32
  }
  func.func @transform_4(%arg0: i32) -> (i32, i32, i32) {
    %c0_i32 = arith.constant 0 : i32
    %c0_i32_0 = arith.constant 0 : i32
    %c0_i32_1 = arith.constant 0 : i32
    %c0_i32_2 = arith.constant 0 : i32
    return %c0_i32, %c0_i32_0, %c0_i32_1 : i32, i32, i32
  }
  func.func @transform_5(%arg0: i32) -> (i32, i32) {
    %c0_i32 = arith.constant 0 : i32
    %c0_i32_0 = arith.constant 0 : i32
    %c0_i32_1 = arith.constant 0 : i32
    return %c0_i32, %c0_i32_0 : i32, i32
  }
  func.func @transform_6(%arg0: i32) -> (i32, i32, i32) {
    %c0_i32 = arith.constant 0 : i32
    %c0_i32_0 = arith.constant 0 : i32
    %c0_i32_1 = arith.constant 0 : i32
    %c0_i32_2 = arith.constant 0 : i32
    return %c0_i32, %c0_i32_0, %c0_i32_1 : i32, i32, i32
  }
  func.func @transform_7(%arg0: i32) -> (i32, i32, i32) {
    %c0_i32 = arith.constant 0 : i32
    %c0_i32_0 = arith.constant 0 : i32
    %c0_i32_1 = arith.constant 0 : i32
    %c0_i32_2 = arith.constant 0 : i32
    return %c0_i32, %c0_i32_0, %c0_i32_1 : i32, i32, i32
  }
  func.func @transform_8(%arg0: i32) -> (i32, i32) {
    %c0_i32 = arith.constant 0 : i32
    %c0_i32_0 = arith.constant 0 : i32
    %c0_i32_1 = arith.constant 0 : i32
    return %c0_i32, %c0_i32_0 : i32, i32
  }
  func.func @transform_9(%arg0: i32) -> (i32, i32) {
    %c0_i32 = arith.constant 0 : i32
    %c0_i32_0 = arith.constant 0 : i32
    %c0_i32_1 = arith.constant 0 : i32
    return %c0_i32, %c0_i32_0 : i32, i32
  }
  func.func @transform_10(%arg0: i32) -> (i32, i32) {
    %c0_i32 = arith.constant 0 : i32
    %c0_i32_0 = arith.constant 0 : i32
    %c0_i32_1 = arith.constant 0 : i32
    return %c0_i32, %c0_i32_0 : i32, i32
  }
  func.func @transform_11(%arg0: i32) -> (i32, i32) {
    %c0_i32 = arith.constant 0 : i32
    %c0_i32_0 = arith.constant 0 : i32
    %c0_i32_1 = arith.constant 0 : i32
    return %c0_i32, %c0_i32_0 : i32, i32
  }
  func.func @transform_12(%arg0: i32) -> (i32, i32) {
    %c0_i32 = arith.constant 0 : i32
    %c0_i32_0 = arith.constant 0 : i32
    %c0_i32_1 = arith.constant 0 : i32
    return %c0_i32, %c0_i32_0 : i32, i32
  }
  func.func @transform_13(%arg0: i32) -> (i32, i32, i32) {
    %c0_i32 = arith.constant 0 : i32
    %c0_i32_0 = arith.constant 0 : i32
    %c0_i32_1 = arith.constant 0 : i32
    return %arg0, %c0_i32, %c0_i32_0 : i32, i32, i32
  }
}

</mosaic_0001>

<bundles_post_ra>
// kernel: lenet_forward.1
= control target key start
LH: loop header
LB: loop body
LE: loop exit
PB: predicated region body
PF: predicated region fallthrough
CT: control target
= control target key end

     0   :  { %18 = vsyncpa [#allocation3], 0  ;;  %s6050_s0 = inlined_call_operand.vmem [shape: f32[2,32,96], index: 0, kind: input, shape index: {}]   ;;  %s6051_s1 = inlined_call_operand.vmem [shape: f32[5,96,168], index: 1, kind: input, shape index: {}]   ;;  %s6052_s2 = inlined_call_operand.vmem [shape: f32[1,162], index: 2, kind: input, shape index: {}]   ;;  %s6053_s3 = inlined_call_operand.vmem [shape: f32[2,14,28], index: 3, kind: input, shape index: {}]   ;;  %s6054_s4 = inlined_call_operand.vmem [shape: f32[5,162,160], index: 4, kind: input, shape index: {}]   ;;  %s6055_s5 = inlined_call_operand.vmem [shape: f32[1,144], index: 5, kind: input, shape index: {}]   ;;  %s6056_s6 = inlined_call_operand.vmem [shape: f32[2,5,10], index: 6, kind: input, shape index: {}]   ;;  %s6057_s7 = inlined_call_operand.vmem [shape: f32[5,144,120], index: 7, kind: input, shape index: {}]   ;;  %s6058_s8 = inlined_call_operand.vmem [shape: f32[1,120], index: 8, kind: input, shape index: {}]   ;;  %s6059_s9 = inlined_call_operand.vmem [shape: f32[120,84], index: 9, kind: input, shape index: {}]   ;;  %s6060_s10 = inlined_call_operand.vmem [shape: f32[1,84], index: 10, kind: input, shape index: {}]   ;;  %s6061_s11 = inlined_call_operand.vmem [shape: f32[84,10], index: 11, kind: input, shape index: {}]   ;;  %s6062_s12 = inlined_call_operand.vmem [shape: f32[1,10], index: 12, kind: input, shape index: {}]   ;;  %s6063_s13 = inlined_call_operand.hbm [shape: f32[2,1,10], index: 13, kind: output, shape index: {}]  }
   0x1   :  { %20 = vsyncpa [#allocation3 + $0x1], 0  ;;  %s4225_s25 = smov 0   ;;  %s4227_s26 = smov 0  }
   0x2   :  { %s4229_s27 = smov 0   ;;  %s4231_s28 = smov 0  }
   0x3 LB: > { %6068 = sst [smem:[#allocation5_spill]] %s4142_s27  ;;  %s4246_s29 = sadd.s32 4294967295, %s4146_s28   ;;  %s4146_s28 = sphi %s4231_s28, %s6075_s28   ;;  %s4142_s27 = sphi %s4229_s27, %s6077_s27   ;;  %s4138_s26 = sphi %s4227_s26, %s6079_s26   ;;  %s4134_s25 = sphi %s4225_s25, %s6078_s25  }
   0x4   : > { %s2950_s30 = sadd.s32 4294967294, %s4146_s28   ;;  %s4250_s14 = sadd.s32 1, %s4146_s28  }
   0x5   : > { %6069 = sst [smem:[#allocation6_spill]] %s4250_s14  ;;  %s311_s15 = sadd.s32 1, %s4142_s27 }
   0x6   : > { %s308_s16 = ssub.s32 %s4146_s28, %s4250_s14  ;;  %p321_p0 = scmp.ne.s32.totalorder %s4142_s27, %s4138_s26 }
   0x7   : > { %p309_p1 = scmp.eq.s32.totalorder %s308_s16, 0  ;;  %p322_p2 = scmp.eq.s32.totalorder %s4246_s29, 1 }
   0x8   : > { %p327_p3 = scmp.ne.s32.totalorder %s4138_s26, %s4134_s25  ;;  %p328_p4 = scmp.eq.s32.totalorder %s2950_s30, 1 }
   0x9   : > { %s4261_s17 = scalar_select %p309_p1, %s4142_s27, %s311_s15  }
   0xa   : > { %p4263_p5 = por %p322_p2, %p321_p0  ;;  %p4267_p6 = por %p328_p4, %p327_p3 }
   0xb   : > { %6070 = sst [smem:[#allocation7_spill]] %s4261_s17  ;;  %p2953_p7 = scmp.ge.s32.totalorder %s4146_s28, 1 }
   0xc   : > { %s6072_s19 = scalar_select %p4267_p6, 1, 0 }
   0xd   : > { %p390_p8 = scmp.lt.s32.totalorder %s4146_s28, 3 }
   0xe   : > { %6073 = sst [smem:[#allocation8_spill]] %s6072_s19 }
   0xf   : > { %p391_p9 = pnand %p2953_p7, %p390_p8 }
  0x10   : > { %v2957_v0 = vld [vmem:[%s6051_s1 + $0xc8] sm:$0xff] (!%p391_p9)  ;;  %v2959_v1 = vld [vmem:[%s6051_s1 + $0xd8] sm:$0xff] (!%p391_p9)  ;;  %v2956_v2 = vld [vmem:[%s6051_s1 + $0xc0] sm:$0xff] (!%p391_p9)  ;;  %p433_p10 = scmp.lt.s32.totalorder (!%p391_p9), %s4246_s29, 1  ;;  %v4148_v7 = vmov (!%p391_p9), 0.0   ;;  %vm861_vm0 = vcmask (!%p391_p9), 1044480  }
  0x11   : > { %394 = sbr.rel (%p391_p9) target bundleno = 2253 (0x8cd), region = 72  ;;  %v3447_v3 = vpack.c.bf16 (!%p391_p9), %v2959_v1, %v2957_v0  ;;  %v2958_v4 = vld [vmem:[%s6051_s1 + $0xd0] sm:$0xff] (!%p391_p9)  ;;  %v2961_v5 = vld [vmem:[%s6051_s1 + $0xe8] sm:$0xff] (!%p391_p9)  ;;  %v2963_v6 = vld [vmem:[%s6051_s1 + $0xf8] sm:$0xff] (!%p391_p9)  ;;  %576 = vmatprep.mubr.f32.mxu0 (!%p391_p9), %v4148_v7  ;;  %1085 = vmatprep.mubr.f32.mxu1 (!%p391_p9), %v4148_v7  ;;  %vm999_vm1 = vcmask (!%p391_p9), 1043456   ;;  %vm495_vm2 = vcmask (!%p391_p9), 1046528  }
  0x12   : > { %v3449_v8 = vpack.c.bf16 (!%p391_p9), %v2958_v4, %v2956_v2  ;;  %v3451_v9 = vpack.c.bf16 (!%p391_p9), %v2963_v6, %v2961_v5  ;;  %v2960_v10 = vld [vmem:[%s6051_s1 + $0xe0] sm:$0xff] (!%p391_p9)  ;;  %v2962_v11 = vld [vmem:[%s6051_s1 + $0xf0] sm:$0xff] (!%p391_p9)  ;;  %v2965_v12 = vld [vmem:[%s6051_s1 + $0x108] sm:$0xff] (!%p391_p9)  ;;  %vm503_vm3 = vcmask (!%p391_p9), 785408   ;;  %vm723_vm4 = vcmask (!%p391_p9), 1045504   ;;  %s4152_s23 = smov (!%p391_p9), 112  }
  0x13   : > { %3448 = vmatprep.subr.bf16.mxu0 (!%p391_p9), %v3447_v3  ;;  %v2967_v13 = vld [vmem:[%s6051_s1 + $0x118] sm:$0xff] (!%p391_p9)  ;;  %v3453_v14 = vpack.c.bf16 (!%p391_p9), %v2962_v11, %v2960_v10  ;;  %v2964_v16 = vld [vmem:[%s6051_s1 + $0x100] sm:$0xff] (!%p391_p9)  ;;  %v2966_v17 = vld [vmem:[%s6051_s1 + $0x110] sm:$0xff] (!%p391_p9)  ;;  %vm4149_vm5 = vmmov (!%p391_p9), 1   ;;  %vm1114_vm7 = vcmask (!%p391_p9), 228352   ;;  %vm1439_vm8 = vcmask (!%p391_p9), 1041408  }
  0x14   : > { %3450 = vmatpush1.bf16.msra.mxu0 (!%p391_p9), %v3449_v8  ;;  %v3455_v15 = vpack.c.bf16 (!%p391_p9), %v2967_v13, %v2965_v12  ;;  %v2969_v18 = vld [vmem:[%s6051_s1 + $0x128] sm:$0xff] (!%p391_p9)  ;;  %v2971_v19 = vld [vmem:[%s6051_s1 + $0x138] sm:$0xff] (!%p391_p9)  ;;  %v3457_v20 = vpack.c.bf16 (!%p391_p9), %v2966_v17, %v2964_v16  ;;  %v2968_v23 = vld [vmem:[%s6051_s1 + $0x120] sm:$0xff] (!%p391_p9)  ;;  %vm1306_vm9 = vcmask (!%p391_p9), 998400   ;;  %vm1434_vm10 = vcmask (!%p391_p9), 277504   ;;  %s431_s22 = sand.u32 (!%p391_p9), 1, %s4138_s26  }
  0x15   : > { %3452 = vmatprep.subr.bf16.mxu0 (!%p391_p9), %v3451_v9  ;;  %v3459_v22 = vpack.c.bf16 (!%p391_p9), %v2971_v19, %v2969_v18  ;;  %v2970_v24 = vld [vmem:[%s6051_s1 + $0x130] sm:$0xff] (!%p391_p9)  ;;  %v2973_v27 = vld [vmem:[%s6051_s1 + $0x148] sm:$0xff] (!%p391_p9)  ;;  %v2975_v28 = vld [vmem:[%s6051_s1 + $0x158] sm:$0xff] (!%p391_p9)  ;;  %vm2037_vm12 = vcmask (!%p391_p9), 80896   ;;  %vm2202_vm13 = vcmask (!%p391_p9), 916480   ;;  %vm2243_vm14 = vcmask (!%p391_p9), 130048  }
  0x16   : > { %v3461_v32 = vpack.c.bf16 (!%p391_p9), %v2970_v24, %v2968_v23  ;;  %v3463_v33 = vpack.c.bf16 (!%p391_p9), %v2975_v28, %v2973_v27  ;;  %v2972_v34 = vld [vmem:[%s6051_s1 + $0x140] sm:$0xff] (!%p391_p9)  ;;  %v2974_v35 = vld [vmem:[%s6051_s1 + $0x150] sm:$0xff] (!%p391_p9)  ;;  %v2977_v39 = vld [vmem:[%s6051_s1 + $0x168] sm:$0xff] (!%p391_p9)  ;;  %vm4153_vm15 = vmmov (!%p391_p9), 0   ;;  %s432_s24 = scalar_lea.vmem (!%p391_p9), [#allocation2], %s431_s22  ;;  %s2883_s16 = scalar_lea.sflag (!%p391_p9), [#allocation3], %s431_s22 }
  0x17   : > { %v2979_v40 = vld [vmem:[%s6051_s1 + $0x178] sm:$0xff] (!%p391_p9)  ;;  %v3465_v42 = vpack.c.bf16 (!%p391_p9), %v2974_v35, %v2972_v34  ;;  %v2976_v44 = vld [vmem:[%s6051_s1 + $0x160] sm:$0xff] (!%p391_p9)  ;;  %v2978_v45 = vld [vmem:[%s6051_s1 + $0x170] sm:$0xff] (!%p391_p9)  ;;  %s2895_s19 = sshll.u32 (!%p391_p9), %s432_s24, 4  ;;  %s6010_s19 = int_to_ptr.vmem [resolvable:$true] %s2895_s19 }
  0x18   : > { %s434_s15 = scalar_select %p433_p10, %s4246_s29, 1  ;;  %3454 = vmatpush1.bf16.msra.mxu0 %v3453_v14  ;;  %v3467_v43 = vpack.c.bf16 %v2979_v40, %v2977_v39  ;;  %v443_v48 = vld [vmem:[%s6051_s1 + $0x8] sm:$0xff]  ;;  %v445_v49 = vld [vmem:[%s6051_s1 + $0x18] sm:$0xff]  ;;  %v3469_v51 = vpack.c.bf16 %v2978_v45, %v2976_v44  ;;  %v442_v56 = vld [vmem:[%s6051_s1] sm:$0xff] }
  0x19   : > { %3456 = vmatprep.subr.bf16.mxu0 %v3455_v15  ;;  %v3471_v55 = vpack.c.bf16 %v445_v49, %v443_v48  ;;  %v444_v57 = vld [vmem:[%s6051_s1 + $0x10] sm:$0xff]  ;;  %v447_v58 = vld [vmem:[%s6051_s1 + $0x28] sm:$0xff]  ;;  %v449_v59 = vld [vmem:[%s6051_s1 + $0x38] sm:$0xff]  ;;  %s4084_s20 = scalar_lea.vmem %s6010_s19, 16 }
  0x1a   : > { %s3360_s21 = sshll.u32 %s434_s15, 5  ;;  %v3473_v61 = vpack.c.bf16 %v444_v57, %v442_v56  ;;  %v3475_v63 = vpack.c.bf16 %v449_v59, %v447_v58  ;;  %v446_v0 = vld [vmem:[%s6051_s1 + $0x20] sm:$0xff]  ;;  %v448_v1 = vld [vmem:[%s6051_s1 + $0x30] sm:$0xff]  ;;  %v451_v2 = vld [vmem:[%s6051_s1 + $0x48] sm:$0xff]  ;;  %p4085_p11 = scmp.ne.s32.totalorder %s6010_s19, %s4084_s20 }
  0x1b   : > { %s4316_s14 = scalar_lea.vmem %s6050_s0, %s3360_s21  ;;  %v453_v3 = vld [vmem:[%s6051_s1 + $0x58] sm:$0xff]  ;;  %v3045_v4 = vld [vmem:[%s6051_s1 + $0x308] sm:$0xff]  ;;  %v3477_v6 = vpack.c.bf16 %v448_v1, %v446_v0  ;;  %v450_v8 = vld [vmem:[%s6051_s1 + $0x40] sm:$0xff]  ;;  %s3357_s21 = sshll.u32 %s4246_s29, 4 }
  0x1c   : > { %v4325_v21 = vld [vmem:[%s4316_s14] sm:$0xff]  ;;  %v4334_v25 = vld [vmem:[%s4316_s14 + $0x8] sm:$0xff]  ;;  %3458 = vmatpush1.bf16.msra.mxu0 %v3457_v20  ;;  %v4353_v36 = vld [vmem:[%s4316_s14 + $0x10] sm:$0xff]  ;;  %v3479_v13 = vpack.c.bf16 %v453_v3, %v451_v2  ;;  %s6008_s17 = scalar_lea.hbm %s6063_s13, %s3357_s21  ;;  %p4086_p12 = pnand %p4085_p11, %p4263_p5 }
  0x1d   : > { %v862_v26 = vrot.slane %v4325_v21, 3  ;;  %v863_v29 = vrot.slane %v4334_v25, 3  ;;  %v1001_v30 = vrot.slane %v4334_v25, 4  ;;  %v1000_v31 = vrot.slane %v4325_v21, 4  ;;  %3460 = vmatprep.subr.bf16.mxu0 %v3459_v22  ;;  %v4377_v46 = vld [vmem:[%s4316_s14 + $0x18] sm:$0xff]  ;;  %v3044_v12 = vld [vmem:[%s6051_s1 + $0x300] sm:$0xff]  ;;  %vm3572_vm6 = vmpackc.low %vm999_vm1, %vm4149_vm5 }
  0x1e   : > { %v865_v41 = vrot.slane %v4353_v36, 3  ;;  %v867_v50 = vrot.slane %v4377_v46, 3  ;;  %v496_v52 = vrot.slane %v4325_v21, 1  ;;  %v497_v53 = vrot.slane %v4334_v25, 1  ;;  %v3047_v5 = vld [vmem:[%s6051_s1 + $0x318] sm:$0xff]  ;;  %v452_v14 = vld [vmem:[%s6051_s1 + $0x50] sm:$0xff]  ;;  %vm3788_vm11 = vmpackc.low %vm1439_vm8, %vm4149_vm5  ;;  %p4087_p13 = pneg %p4086_p12 }
  0x1f   : > { %v4356_v37 = vsel %vm861_vm0, %v862_v26, %v863_v29  ;;  %v4361_v38 = vsel %vm999_vm1, %v1000_v31, %v1001_v30  ;;  %v499_v62 = vrot.slane %v4353_v36, 1  ;;  %v501_v10 = vrot.slane %v4377_v46, 1  ;;  %v455_v15 = vld [vmem:[%s6051_s1 + $0x68] sm:$0xff]  ;;  %v3046_v16 = vld [vmem:[%s6051_s1 + $0x310] sm:$0xff]  ;;  %v457_v17 = vld [vmem:[%s6051_s1 + $0x78] sm:$0xff]  ;;  %s4150_s14 = smov 122  }
  0x20   : > { %3462 = vmatpush1.bf16.msra.mxu0 %v3461_v32  ;;  %v4380_v47 = vsel %vm861_vm0, %v863_v29, %v865_v41  ;;  %v4394_v54 = vsel %vm861_vm0, %v865_v41, %v867_v50  ;;  %v498_v60 = vsel %vm495_vm2, %v496_v52, %v497_v53  ;;  %v4435_v11 = vpack.c.bf16 %v3047_v5, %v3045_v4  ;;  %v3049_v19 = vld [vmem:[%s6051_s1 + $0x328] sm:$0xff]  ;;  %v3051_v20 = vld [vmem:[%s6051_s1 + $0x338] sm:$0xff]  ;;  %v3048_v23 = vld [vmem:[%s6051_s1 + $0x320] sm:$0xff]  ;;  %s4154_s29 = smov [#allocation2]  }
  0x21   : > { %3464 = vmatprep.subr.bf16.mxu0 %v3463_v33  ;;  %v500_v9 = vsel %vm495_vm2, %v497_v53, %v499_v62  ;;  %v4453_v18 = vpack.c.bf16 %v3046_v16, %v3044_v12  ;;  %v4462_v22 = vpack.c.bf16 %v3051_v20, %v3049_v19  ;;  %v3050_v24 = vld [vmem:[%s6051_s1 + $0x330] sm:$0xff]  ;;  %v3481_v26 = vpack.c.bf16 %v452_v14, %v450_v8  ;;  %v454_v27 = vld [vmem:[%s6051_s1 + $0x60] sm:$0xff]  ;;  %v3053_v29 = vld [vmem:[%s6051_s1 + $0x348] sm:$0xff]  ;;  %s4088_s15 = sshll.u32 %s4154_s29, 4  ;;  %s4089_s15 = int_to_ptr.vmem [resolvable:$false] %s4088_s15 }
  0x22   : > { %3970 = vmatprep.subr.bf16.mxu1 %v4435_v11  ;;  %v502_v28 = vsel %vm495_vm2, %v499_v62, %v501_v10  ;;  %v3483_v31 = vpack.c.bf16 %v457_v17, %v455_v15  ;;  %v456_v32 = vld [vmem:[%s6051_s1 + $0x70] sm:$0xff]  ;;  %v459_v33 = vld [vmem:[%s6051_s1 + $0x88] sm:$0xff]  ;;  %v4485_v34 = vpack.c.bf16 %v3050_v24, %v3048_v23  ;;  %v3055_v35 = vld [vmem:[%s6051_s1 + $0x358] sm:$0xff]  ;;  %p4091_p0 = scmp.lt.s32.totalorder %s6010_s19, %s4089_s15 }
  0x23   : > { %3976 = vmatpush1.bf16.msra.mxu1 %v4453_v18  ;;  %v461_v39 = vld [vmem:[%s6051_s1 + $0x98] sm:$0xff]  ;;  %v4494_v40 = vpack.c.bf16 %v3055_v35, %v3053_v29  ;;  %v3052_v41 = vld [vmem:[%s6051_s1 + $0x340] sm:$0xff]  ;;  %v3485_v45 = vpack.c.bf16 %v456_v32, %v454_v27  ;;  %v463_v52 = vld [vmem:[%s6051_s1 + $0xa8] sm:$0xff] }
  0x24   : > { %3466 = vmatpush1.bf16.msra.mxu0 %v3465_v42  ;;  %3971 = vmatprep.subr.bf16.mxu1 %v4462_v22  ;;  %v3054_v42 = vld [vmem:[%s6051_s1 + $0x350] sm:$0xff]  ;;  %v3059_v44 = vld [vmem:[%s6051_s1 + $0x378] sm:$0xff]  ;;  %v3487_v48 = vpack.c.bf16 %v461_v39, %v459_v33  ;;  %v458_v49 = vld [vmem:[%s6051_s1 + $0x80] sm:$0xff]  ;;  %v1003_v33 = vrot.slane %v4353_v36, 4 }
  0x25   : > { %3468 = vmatprep.subr.bf16.mxu0 %v3467_v43  ;;  %v3057_v43 = vld [vmem:[%s6051_s1 + $0x368] sm:$0xff]  ;;  %v4520_v53 = vpack.c.bf16 %v3054_v42, %v3052_v41  ;;  %v3056_v57 = vld [vmem:[%s6051_s1 + $0x360] sm:$0xff]  ;;  %v3058_v58 = vld [vmem:[%s6051_s1 + $0x370] sm:$0xff] }
  0x26   : > { %v4526_v56 = vpack.c.bf16 %v3059_v44, %v3057_v43  ;;  %v3061_v59 = vld [vmem:[%s6051_s1 + $0x388] sm:$0xff]  ;;  %v464_v0 = vld [vmem:[%s6051_s1 + $0xb0] sm:$0xff]  ;;  %v4552_v2 = vpack.c.bf16 %v3058_v58, %v3056_v57  ;;  %v2991_v3 = vld [vmem:[%s6051_s1 + $0x198] sm:$0xff] }
  0x27   : > { %3977 = vmatpush1.bf16.msra.mxu1 %v4485_v34  ;;  %v2989_v1 = vld [vmem:[%s6051_s1 + $0x188] sm:$0xff]  ;;  %v3060_v5 = vld [vmem:[%s6051_s1 + $0x380] sm:$0xff]  ;;  %v2990_v14 = vld [vmem:[%s6051_s1 + $0x190] sm:$0xff] }
  0x28   : > { %3470 = vmatpush1.bf16.msra.mxu0 %v3469_v51  ;;  %v460_v51 = vld [vmem:[%s6051_s1 + $0x90] sm:$0xff]  ;;  %3972 = vmatprep.subr.bf16.mxu1 %v4494_v40  ;;  %v3065_v8 = vld [vmem:[%s6051_s1 + $0x3a8] sm:$0xff]  ;;  %v3495_v12 = vpack.c.bf16 %v2991_v3, %v2989_v1  ;;  %v2995_v17 = vld [vmem:[%s6051_s1 + $0x1b8] sm:$0xff] }
  0x29   : > { %3472 = vmatprep.subr.bf16.mxu0 %v3471_v55  ;;  %v465_v55 = vld [vmem:[%s6051_s1 + $0xb8] sm:$0xff]  ;;  %v2993_v15 = vld [vmem:[%s6051_s1 + $0x1a8] sm:$0xff]  ;;  %v3064_v20 = vld [vmem:[%s6051_s1 + $0x3a0] sm:$0xff] }
  0x2a   : > { %v3491_v62 = vpack.c.bf16 %v465_v55, %v463_v52  ;;  %v3066_v23 = vld [vmem:[%s6051_s1 + $0x3b0] sm:$0xff]  ;;  %v2992_v27 = vld [vmem:[%s6051_s1 + $0x1a0] sm:$0xff]  ;;  %v2999_v32 = vld [vmem:[%s6051_s1 + $0x1d8] sm:$0xff] }
  0x2b   : > { %2980 = vmatmul.mubr.msk.f32.vlgmr.msra.gmra.mrb[0].mxu0 %vm503_vm3, %v498_v60  ;;  %v3063_v60 = vld [vmem:[%s6051_s1 + $0x398] sm:$0xff]  ;;  %3978 = vmatpush1.bf16.msra.mxu1 %v4520_v53  ;;  %v4603_v29 = vpack.c.bf16 %v3066_v23, %v3064_v20  ;;  %v2996_v41 = vld [vmem:[%s6051_s1 + $0x1c0] sm:$0xff]  ;;  %v2998_v42 = vld [vmem:[%s6051_s1 + $0x1d0] sm:$0xff] }
  0x2c   : > { %3474 = vmatpush1.bf16.msra.mxu0 %v3473_v61  ;;  %582 = vmatprep.mubr.f32.mxu0 %v4148_v7  ;;  %v3489_v61 = vpack.c.bf16 %v460_v51, %v458_v49  ;;  %v4558_v4 = vpack.c.bf16 %v3063_v60, %v3061_v59  ;;  %v3001_v43 = vld [vmem:[%s6051_s1 + $0x1e8] sm:$0xff]  ;;  %v3003_v44 = vld [vmem:[%s6051_s1 + $0x1f8] sm:$0xff]  ;;  %v3505_v49 = vpack.c.bf16 %v2998_v42, %v2996_v41  ;;  %v3000_v52 = vld [vmem:[%s6051_s1 + $0x1e0] sm:$0xff] }
  0x2d   : > { %3476 = vmatprep.subr.bf16.mxu0 %v3475_v63  ;;  %v462_v63 = vld [vmem:[%s6051_s1 + $0xa0] sm:$0xff]  ;;  %3973 = vmatprep.subr.bf16.mxu1 %v4526_v56  ;;  %v3507_v51 = vpack.c.bf16 %v3003_v44, %v3001_v43  ;;  %v3002_v55 = vld [vmem:[%s6051_s1 + $0x1f0] sm:$0xff]  ;;  %v3007_v57 = vld [vmem:[%s6051_s1 + $0x218] sm:$0xff] }
  0x2e   : > { %v3509_v59 = vpack.c.bf16 %v3002_v55, %v3000_v52  ;;  %v3021_v20 = vld [vmem:[%s6051_s1 + $0x268] sm:$0xff]  ;;  %v3024_v41 = vld [vmem:[%s6051_s1 + $0x280] sm:$0xff]  ;;  %v3026_v42 = vld [vmem:[%s6051_s1 + $0x290] sm:$0xff] }
  0x2f   : > { %2981 = vmatmul.mubr.msk.f32.gmra.mrb[2].mxu0 %vm503_vm3, %v500_v9  ;;  %v3067_v9 = vld [vmem:[%s6051_s1 + $0x3b8] sm:$0xff]  ;;  %3979 = vmatpush1.bf16.msra.mxu1 %v4552_v2  ;;  %v3029_v43 = vld [vmem:[%s6051_s1 + $0x2a8] sm:$0xff]  ;;  %v3030_v52 = vld [vmem:[%s6051_s1 + $0x2b0] sm:$0xff] }
  0x30   : > { %3478 = vmatpush1.bf16.msra.mxu0 %v3477_v6  ;;  %588 = vmatprep.mubr.f32.mxu0 %v4148_v7  ;;  %v3062_v6 = vld [vmem:[%s6051_s1 + $0x390] sm:$0xff]  ;;  %v4588_v19 = vpack.c.bf16 %v3067_v9, %v3065_v8  ;;  %v3017_v8 = vld [vmem:[%s6051_s1 + $0x248] sm:$0xff]  ;;  %v3019_v9 = vld [vmem:[%s6051_s1 + $0x258] sm:$0xff] }
  0x31   : > { %3480 = vmatprep.subr.bf16.mxu0 %v3479_v13  ;;  %v2988_v13 = vld [vmem:[%s6051_s1 + $0x180] sm:$0xff]  ;;  %v4582_v16 = vpack.c.bf16 %v3062_v6, %v3060_v5  ;;  %3974 = vmatprep.subr.bf16.mxu1 %v4558_v4  ;;  %v3010_v6 = vld [vmem:[%s6051_s1 + $0x230] sm:$0xff]  ;;  %v3031_v44 = vld [vmem:[%s6051_s1 + $0x2b8] sm:$0xff] }
  0x32   : > { %v3497_v24 = vpack.c.bf16 %v2990_v14, %v2988_v13  ;;  %v3008_v5 = vld [vmem:[%s6051_s1 + $0x220] sm:$0xff]  ;;  %v725_v13 = vrot.slane %v4334_v25, 2  ;;  %v3519_v14 = vpack.c.bf16 %v3019_v9, %v3017_v8  ;;  %v3033_v55 = vld [vmem:[%s6051_s1 + $0x2c8] sm:$0xff] }
  0x33   : > { %2982 = vmatmul.mubr.msk.f32.gmra.mrb[4].mxu0 %vm503_vm3, %v502_v28  ;;  %v2994_v28 = vld [vmem:[%s6051_s1 + $0x1b0] sm:$0xff]  ;;  %3980 = vmatpush1.bf16.msra.mxu1 %v4582_v16 }
  0x34   : > { %3482 = vmatpush1.bf16.msra.mxu0 %v3481_v26  ;;  %594 = vmatprep.mubr.f32.mxu0 %v4148_v7  ;;  %v3499_v26 = vpack.c.bf16 %v2995_v17, %v2993_v15  ;;  %v3501_v35 = vpack.c.bf16 %v2994_v28, %v2992_v27  ;;  %v3016_v15 = vld [vmem:[%s6051_s1 + $0x240] sm:$0xff]  ;;  %v3018_v17 = vld [vmem:[%s6051_s1 + $0x250] sm:$0xff] }
  0x35   : > { %3484 = vmatprep.subr.bf16.mxu0 %v3483_v31  ;;  %v2997_v31 = vld [vmem:[%s6051_s1 + $0x1c8] sm:$0xff]  ;;  %3975 = vmatprep.subr.bf16.mxu1 %v4588_v19  ;;  %v3521_v23 = vpack.c.bf16 %v3018_v17, %v3016_v15  ;;  %v3020_v27 = vld [vmem:[%s6051_s1 + $0x260] sm:$0xff]  ;;  %v3022_v28 = vld [vmem:[%s6051_s1 + $0x270] sm:$0xff] }
  0x36   : > { %v3503_v39 = vpack.c.bf16 %v2999_v32, %v2997_v31  ;;  %v3025_v31 = vld [vmem:[%s6051_s1 + $0x288] sm:$0xff]  ;;  %v3027_v32 = vld [vmem:[%s6051_s1 + $0x298] sm:$0xff]  ;;  %v3076_v17 = vld [vmem:[%s6053_s3 + $0x10] sm:$0xff] }
  0x37   : > { %2983 = vmatmul.mubr.msk.f32.gmra.mrb[6].mxu0 %vm503_vm3, %v501_v10  ;;  %v3493_v10 = vpack.c.bf16 %v464_v0, %v462_v63  ;;  %3981 = vmatpush1.bf16.msra.mxu1 %v4603_v29  ;;  %v3009_v63 = vld [vmem:[%s6051_s1 + $0x228] sm:$0xff]  ;;  %v3011_v0 = vld [vmem:[%s6051_s1 + $0x238] sm:$0xff] }
  0x38   : > { %3486 = vmatpush1.bf16.msra.mxu0 %v3485_v45  ;;  %673 = vmatprep.mubr.f32.mxu0 %v4148_v7  ;;  %v1004_v45 = vsel %vm999_vm1, %v1001_v30, %v1003_v33  ;;  %v3005_v30 = vld [vmem:[%s6051_s1 + $0x208] sm:$0xff]  ;;  %v3515_v3 = vpack.c.bf16 %v3011_v0, %v3009_v63 }
  0x39   : > { %3488 = vmatprep.subr.bf16.mxu0 %v3487_v48  ;;  %v1005_v48 = vrot.slane %v4377_v46, 4  ;;  %v3511_v60 = vpack.c.bf16 %v3007_v57, %v3005_v30  ;;  %v3035_v30 = vld [vmem:[%s6051_s1 + $0x2d8] sm:$0xff]  ;;  %v1113_v15 = vld [vmem:[%s6053_s3 + $0x8] sm:$0x3f] }
  0x3a   : > { %3069 = vmatmul.mubr.msk.f32.vlgmr.msra.gmra.mrb[0].mxu1 %vm503_vm3, %v1004_v45  ;;  %v3529_v45 = vpack.c.bf16 %v3026_v42, %v3024_v41 }
  0x3b   : > { %1091 = vmatprep.mubr.f32.mxu1 %v4148_v7  ;;  %v1006_v58 = vsel %vm999_vm1, %v1003_v33, %v1005_v48 }
  0x3c   : > { %3490 = vmatpush1.bf16.msra.mxu0 %v3489_v61  ;;  %v3004_v61 = vld [vmem:[%s6051_s1 + $0x200] sm:$0xff] }
  0x3d   : > { %3492 = vmatprep.subr.bf16.mxu0 %v3491_v62  ;;  %v3006_v62 = vld [vmem:[%s6051_s1 + $0x210] sm:$0xff] }
  0x3e   : > { %3070 = vmatmul.mubr.msk.f32.gmra.mrb[2].mxu1 %vm503_vm3, %v1006_v58  ;;  %v3513_v1 = vpack.c.bf16 %v3006_v62, %v3004_v61  ;;  %v3535_v58 = vpack.c.bf16 %v3035_v30, %v3033_v55  ;;  %v3037_v61 = vld [vmem:[%s6051_s1 + $0x2e8] sm:$0xff]  ;;  %v3039_v62 = vld [vmem:[%s6051_s1 + $0x2f8] sm:$0xff]  ;;  %v3096_v55 = vld [vmem:[%s6054_s4 + $0x1c0] sm:$0xff] }
  0x3f   : > { %1097 = vmatprep.mubr.f32.mxu1 %v4148_v7  ;;  %v3539_v0 = vpack.c.bf16 %v3039_v62, %v3037_v61  ;;  %v3099_v30 = vld [vmem:[%s6054_s4 + $0x1d8] sm:$0xff]  ;;  %v3100_v61 = vld [vmem:[%s6054_s4 + $0x1e0] sm:$0xff] }
  0x40   : > { %3494 = vmatpush1.bf16.msra.mxu0 %v3493_v10  ;;  %v3517_v10 = vpack.c.bf16 %v3010_v6, %v3008_v5  ;;  %v3103_v62 = vld [vmem:[%s6054_s4 + $0x1f8] sm:$0xff] }
  0x41   : > { %3496 = vmatprep.subr.bf16.mxu0 %v3495_v12  ;;  %v724_v12 = vrot.slane %v4325_v21, 2 }
  0x42   : > { %3071 = vmatmul.mubr.msk.f32.gmra.mrb[4].mxu1 %vm503_vm3, %v1005_v48 }
  0x43   : > { %2984 = vmatmul.mubr.msk.f32.vlgmr.msra.gmra.mrb[0].mxu0 %vm503_vm3, %v4325_v21  ;;  %1191 = vmatprep.mubr.f32.mxu1 %v4148_v7  ;;  %v3023_v21 = vld [vmem:[%s6051_s1 + $0x278] sm:$0xff] }
  0x44   : > { %3498 = vmatpush1.bf16.msra.mxu0 %v3497_v24  ;;  %679 = vmatprep.mubr.f32.mxu0 %v4148_v7  ;;  %v727_v24 = vrot.slane %v4353_v36, 2 }
  0x45   : > { %3500 = vmatprep.subr.bf16.mxu0 %v3499_v26  ;;  %v3523_v26 = vpack.c.bf16 %v3023_v21, %v3021_v20  ;;  %v3077_v20 = vld [vmem:[%s6053_s3 + $0x18] sm:$0x3f] }
  0x46   : > { %v728_v33 = vsel %vm723_vm4, %v725_v13, %v727_v24  ;;  %v3083_v21 = vld [vmem:[%s6054_s4 + $0x158] sm:$0xff] }
  0x47   : > { %2985 = vmatmul.mubr.msk.f32.gmra.mrb[2].mxu0 %vm503_vm3, %v4334_v25  ;;  %v726_v25 = vsel %vm723_vm4, %v724_v12, %v725_v13 }
  0x48   : > { %3502 = vmatpush1.bf16.msra.mxu0 %v3501_v35  ;;  %685 = vmatprep.mubr.f32.mxu0 %v4148_v7  ;;  %v729_v35 = vrot.slane %v4377_v46, 2 }
  0x49   : > { %3504 = vmatprep.subr.bf16.mxu0 %v3503_v39  ;;  %v3527_v39 = vpack.c.bf16 %v3027_v32, %v3025_v31 }
  0x4a   : > { %v730_v48 = vsel %vm723_vm4, %v727_v24, %v729_v35 }
  0x4b   : > { %2986 = vmatmul.mubr.msk.f32.gmra.mrb[4].mxu0 %vm503_vm3, %v4353_v36  ;;  %v3525_v36 = vpack.c.bf16 %v3022_v28, %v3020_v27  ;;  %v3087_v27 = vld [vmem:[%s6054_s4 + $0x178] sm:$0xff]  ;;  %v3089_v28 = vld [vmem:[%s6054_s4 + $0x188] sm:$0xff] }
  0x4c   : > { %3506 = vmatpush1.bf16.msra.mxu0 %v3505_v49  ;;  %691 = vmatprep.mubr.f32.mxu0 %v4148_v7  ;;  %v3531_v49 = vpack.c.bf16 %v3031_v44, %v3029_v43  ;;  %v3591_v32 = vpack.c.bf16 %v3089_v28, %v3087_v27  ;;  %v3090_v43 = vld [vmem:[%s6054_s4 + $0x190] sm:$0xff]  ;;  %v3092_v44 = vld [vmem:[%s6054_s4 + $0x1a0] sm:$0xff]  ;;  %v3123_v27 = vld [vmem:[%s6054_s4 + $0x298] sm:$0x3] }
  0x4d   : > { %3508 = vmatprep.subr.bf16.mxu0 %v3507_v51  ;;  %v3028_v51 = vld [vmem:[%s6051_s1 + $0x2a0] sm:$0xff]  ;;  %v3122_v28 = vld [vmem:[%s6054_s4 + $0x290] sm:$0x3] }
  0x4e   : > { %v3533_v57 = vpack.c.bf16 %v3030_v52, %v3028_v51  ;;  %v3094_v52 = vld [vmem:[%s6054_s4 + $0x1b0] sm:$0xff] }
  0x4f   : > { %2987 = vmatmul.mubr.msk.f32.gmra.mrb[6].mxu0 %vm503_vm3, %v4377_v46 }
  0x50   : > { %3510 = vmatpush1.bf16.msra.mxu0 %v3509_v59  ;;  %803 = vmatprep.mubr.f32.mxu0 %v4148_v7  ;;  %v3032_v59 = vld [vmem:[%s6051_s1 + $0x2c0] sm:$0xff] }
  0x51   : > { %3512 = vmatprep.subr.bf16.mxu0 %v3511_v60  ;;  %v3034_v60 = vld [vmem:[%s6051_s1 + $0x2d0] sm:$0xff] }
  0x52   : > { %v3537_v63 = vpack.c.bf16 %v3034_v60, %v3032_v59  ;;  %v3098_v60 = vld [vmem:[%s6054_s4 + $0x1d0] sm:$0xff] }
  0x54   : > { %3514 = vmatpush1.bf16.msra.mxu0 %v3513_v1  ;;  %v3036_v1 = vld [vmem:[%s6051_s1 + $0x2e0] sm:$0xff] }
  0x55   : > { %3516 = vmatprep.subr.bf16.mxu0 %v3515_v3  ;;  %v3038_v3 = vld [vmem:[%s6051_s1 + $0x2f0] sm:$0xff] }
  0x56   : > { %v3541_v5 = vpack.c.bf16 %v3038_v3, %v3036_v1  ;;  %v3102_v3 = vld [vmem:[%s6054_s4 + $0x1f0] sm:$0xff] }
  0x58   : > { %3518 = vmatpush1.bf16.msra.mxu0 %v3517_v10 }
  0x59   : > { %3520 = vmatprep.subr.bf16.mxu0 %v3519_v14  ;;  %v1112_v14 = vld [vmem:[%s6053_s3] sm:$0xff] }
  0x5b   : > { %3012 = vmatmul.mubr.msk.f32.vlgmr.msra.gmra.mrb[0].mxu0 %vm503_vm3, %v726_v25  ;;  %v3085_v25 = vld [vmem:[%s6054_s4 + $0x168] sm:$0xff] }
  0x5c   : > { %3522 = vmatpush1.bf16.msra.mxu0 %v3521_v23  ;;  %809 = vmatprep.mubr.f32.mxu0 %v4148_v7  ;;  %v3082_v23 = vld [vmem:[%s6054_s4 + $0x150] sm:$0xff]  ;;  %v3587_v24 = vpack.c.bf16 %v3085_v25, %v3083_v21 }
  0x5d   : > { %3524 = vmatprep.subr.bf16.mxu0 %v3523_v26  ;;  %v3084_v26 = vld [vmem:[%s6054_s4 + $0x160] sm:$0xff] }
  0x5e   : > { %v3589_v31 = vpack.c.bf16 %v3084_v26, %v3082_v23 }
  0x5f   : > { %3013 = vmatmul.mubr.msk.f32.gmra.mrb[2].mxu0 %vm503_vm3, %v728_v33  ;;  %v3088_v33 = vld [vmem:[%s6054_s4 + $0x180] sm:$0xff] }
  0x60   : > { %3526 = vmatpush1.bf16.msra.mxu0 %v3525_v36  ;;  %815 = vmatprep.mubr.f32.mxu0 %v4148_v7  ;;  %v3086_v36 = vld [vmem:[%s6054_s4 + $0x170] sm:$0xff] }
  0x61   : > { %3528 = vmatprep.subr.bf16.mxu0 %v3527_v39  ;;  %v3093_v39 = vld [vmem:[%s6054_s4 + $0x1a8] sm:$0xff]  ;;  %v3593_v41 = vpack.c.bf16 %v3088_v33, %v3086_v36  ;;  %v1340_v36 = vld [vmem:[%s6054_s4 + $0x18] sm:$0xff] }
  0x63   : > { %3014 = vmatmul.mubr.msk.f32.gmra.mrb[4].mxu0 %vm503_vm3, %v730_v48  ;;  %v3097_v48 = vld [vmem:[%s6054_s4 + $0x1c8] sm:$0xff] }
  0x64   : > { %3530 = vmatpush1.bf16.msra.mxu0 %v3529_v45  ;;  %821 = vmatprep.mubr.f32.mxu0 %v4148_v7  ;;  %v3095_v45 = vld [vmem:[%s6054_s4 + $0x1b8] sm:$0xff] }
  0x65   : > { %3532 = vmatprep.subr.bf16.mxu0 %v3531_v49  ;;  %v3597_v49 = vpack.c.bf16 %v3092_v44, %v3090_v43  ;;  %v3599_v51 = vpack.c.bf16 %v3097_v48, %v3095_v45  ;;  %v1317_v48 = vld [vmem:[%s6052_s2] sm:$0x3] }
  0x67   : > { %3015 = vmatmul.mubr.msk.f32.gmra.mrb[6].mxu0 %vm503_vm3, %v729_v35  ;;  %v3091_v35 = vld [vmem:[%s6054_s4 + $0x198] sm:$0xff] }
  0x68   : > { %3534 = vmatpush1.bf16.msra.mxu0 %v3533_v57  ;;  %941 = vmatprep.mubr.f32.mxu0 %v4148_v7  ;;  %v3595_v42 = vpack.c.bf16 %v3093_v39, %v3091_v35  ;;  %v3101_v57 = vld [vmem:[%s6054_s4 + $0x1e8] sm:$0xff] }
  0x69   : > { %3536 = vmatprep.subr.bf16.mxu0 %v3535_v58  ;;  %v3601_v58 = vpack.c.bf16 %v3096_v55, %v3094_v52  ;;  %v3603_v59 = vpack.c.bf16 %v3101_v57, %v3099_v30 }
  0x6c   : > { %3538 = vmatpush1.bf16.msra.mxu0 %v3537_v63  ;;  %v3105_v63 = vld [vmem:[%s6054_s4 + $0x208] sm:$0xff] }
  0x6d   : > { %3540 = vmatprep.subr.bf16.mxu0 %v3539_v0  ;;  %v3605_v0 = vpack.c.bf16 %v3100_v61, %v3098_v60  ;;  %v3607_v1 = vpack.c.bf16 %v3105_v63, %v3103_v62 }
  0x70   : > { %3542 = vmatpush1.bf16.msra.mxu0 %v3541_v5  ;;  %v3104_v5 = vld [vmem:[%s6054_s4 + $0x200] sm:$0xff] }
  0x71   : > { %3544 = vmatprep.subr.bf16.mxu0 %v4435_v11 }
  0x73   : > { %3040 = vmatmul.mubr.msk.f32.vlgmr.msra.gmra.mrb[0].mxu0 %vm503_vm3, %v4356_v37 }
  0x74   : > { %3546 = vmatpush1.bf16.msra.mxu0 %v4453_v18  ;;  %947 = vmatprep.mubr.f32.mxu0 %v4148_v7 }
  0x75   : > { %3548 = vmatprep.subr.bf16.mxu0 %v4462_v22 }
  0x77   : > { %3041 = vmatmul.mubr.msk.f32.gmra.mrb[2].mxu0 %vm503_vm3, %v4380_v47 }
  0x78   : > { %3550 = vmatpush1.bf16.msra.mxu0 %v4485_v34  ;;  %953 = vmatprep.mubr.f32.mxu0 %v4148_v7 }
  0x79   : > { %3552 = vmatprep.subr.bf16.mxu0 %v4494_v40 }
  0x7b   : > { %3042 = vmatmul.mubr.msk.f32.gmra.mrb[4].mxu0 %vm503_vm3, %v4394_v54 }
  0x7c   : > { %3554 = vmatpush1.bf16.msra.mxu0 %v4520_v53  ;;  %959 = vmatprep.mubr.f32.mxu0 %v4148_v7 }
  0x7d   : > { %3556 = vmatprep.subr.bf16.mxu0 %v4526_v56 }
  0x7f   : > { %3043 = vmatmul.mubr.msk.f32.gmra.mrb[6].mxu0 %vm503_vm3, %v867_v50 }
  0x80   : > { %3558 = vmatpush1.bf16.msra.mxu0 %v4552_v2  ;;  %1079 = vmatprep.mubr.f32.mxu0 %v4148_v7 }
  0x81   : > { %3560 = vmatprep.subr.bf16.mxu0 %v4558_v4 }
  0x84   : > { %3562 = vmatpush1.bf16.msra.mxu0 %v4582_v16 }
  0x85   : > { %3564 = vmatprep.subr.bf16.mxu0 %v4588_v19 }
  0x88   : > { %3566 = vmatpush1.bf16.msra.mxu0 %v4603_v29 }
  0x8b   : > { %3068 = vmatmul.mubr.msk.f32.vlgmr.msra.gmra.mrb[0].mxu0 %vm503_vm3, %v4361_v38 }
  0x8c   : > { %2111 = vmatprep.mubr.f32.mxu0 %v4148_v7 }
 0x10d   : > { %v1087_v37 = vpop.f32.mrb[0].mxu1 }
 0x10e   : > { %v1089_v46 = vpop.f32.mrb[1].mxu1 }
 0x111   : > { %v1093_v47 = vpop.f32.mrb[2].mxu1 }
 0x112   : > { %v1095_v50 = vpop.f32.mrb[3].mxu1 }
 0x115   : > { %v1099_v54 = vpop.f32.mrb[4].mxu1 }
 0x116   : > { %v1101_v11 = vpop.f32.mrb[5].mxu1 }
 0x14a   : > { %v949_v18 = vpop.f32.mrb[2].mxu0 }
 0x14b   : > { %v3982_v22 = vadd.f32 %v1087_v37, %v949_v18  ;;  %v951_v34 = vpop.f32.mrb[3].mxu0  ;;  %v3107_v37 = vld [vmem:[%s6054_s4 + $0x218] sm:$0xff] }
 0x14c   : > { %v3983_v40 = vadd.f32 %v1089_v46, %v951_v34  ;;  %v3109_v46 = vld [vmem:[%s6054_s4 + $0x228] sm:$0xff] }
 0x14d   : > { %v3113_v34 = vld [vmem:[%s6054_s4 + $0x248] sm:$0xff] }
 0x14e   : > { %v955_v53 = vpop.f32.mrb[4].mxu0 }
 0x14f   : > { %v3984_v56 = vadd.f32 %v1093_v47, %v955_v53  ;;  %v957_v2 = vpop.f32.mrb[5].mxu0  ;;  %v3609_v47 = vpack.c.bf16 %v3104_v5, %v3102_v3  ;;  %v3110_v53 = vld [vmem:[%s6054_s4 + $0x230] sm:$0xff] }
 0x150   : > { %v3985_v4 = vadd.f32 %v1095_v50, %v957_v2  ;;  %v3611_v50 = vpack.c.bf16 %v3109_v46, %v3107_v37  ;;  %v1339_v46 = vld [vmem:[%s6054_s4 + $0x10] sm:$0xff] }
 0x152   : > { %v961_v16 = vpop.f32.mrb[6].mxu0 }
 0x153   : > { %v3986_v19 = vadd.f32 %v1099_v54, %v961_v16  ;;  %v963_v29 = vpop.f32.mrb[7].mxu0  ;;  %v3106_v54 = vld [vmem:[%s6054_s4 + $0x210] sm:$0xff] }
 0x154   : > { %v3987_v38 = vadd.f32 %v1101_v11, %v963_v29  ;;  %v3108_v11 = vld [vmem:[%s6054_s4 + $0x220] sm:$0xff]  ;;  %v3117_v29 = vld [vmem:[%s6054_s4 + $0x268] sm:$0xff] }
 0x155   : > { %v3574_v6 = vpack.c.bf16 %v3986_v19, %v3984_v56  ;;  %v3613_v18 = vpack.c.bf16 %v3108_v11, %v3106_v54  ;;  %v3112_v56 = vld [vmem:[%s6054_s4 + $0x240] sm:$0xff]  ;;  %v3115_v19 = vld [vmem:[%s6054_s4 + $0x258] sm:$0xff] }
 0x156   : > { %v3571_v8 = vpack.c.bf16 %v3987_v38, %v3985_v4  ;;  %v3617_v4 = vpack.c.bf16 %v3112_v56, %v3110_v53  ;;  %v3619_v38 = vpack.c.bf16 %v3117_v29, %v3115_v19 }
 0x15e   : > { %v1081_v9 = vpop.f32.mrb[0].mxu0 }
 0x15f   : > { %v3569_v10 = vpack.c.bf16 %v3982_v22, %v1081_v9  ;;  %v1083_v12 = vpop.f32.mrb[1].mxu0  ;;  %v3111_v22 = vld [vmem:[%s6054_s4 + $0x238] sm:$0xff] }
 0x160   : > { %v3567_v13 = vpack.c.bf16 %v3983_v40, %v1083_v12  ;;  %v3615_v40 = vpack.c.bf16 %v3113_v34, %v3111_v22 }
 0x162   : > { %3568 = vmatprep.subr.bf16.mxu1 %v3567_v13 }
 0x163   : > { %3570 = vmatpush1.bf16.msra.mxu1 %v3569_v10 }
 0x164   : > { %3573 = vmatprep.subr.msk.bf16.mxu1 %vm3572_vm6, %v3571_v8 }
 0x167   : > { %3576 = vmatpush1.bf16.msk.msra.mxu1 %vm3572_vm6, %v3574_v6 }
 0x168   : > { %3578 = vmatprep.subr.bf16.mxu1 %v3567_v13  ;;  %v3119_v13 = vld [vmem:[%s6054_s4 + $0x278] sm:$0xff] }
 0x16a   : > { %3074 = vmatmul.mubr.msk.f32.vlgmr.msra.gmra.mrb[6].mxu1 %vm1114_vm7, %v1112_v14  ;;  %v3121_v14 = vld [vmem:[%s6054_s4 + $0x288] sm:$0xff] }
 0x16b   : > { %3580 = vmatpush1.bf16.msra.mxu1 %v3569_v10  ;;  %1197 = vmatprep.mubr.f32.mxu1 %v4148_v7 }
 0x16c   : > { %3583 = vmatprep.subr.msk.bf16.mxu1 %vm3572_vm6, %v3571_v8  ;;  %v3116_v8 = vld [vmem:[%s6054_s4 + $0x260] sm:$0xff] }
 0x16e   : > { %3075 = vmatmul.mubr.msk.f32.gmra.mrb[8].mxu1 %vm1114_vm7, %v1113_v15  ;;  %v3623_v15 = vpack.c.bf16 %v3121_v14, %v3119_v13  ;;  %v1343_v13 = vld [vmem:[%s6054_s4 + $0x30] sm:$0xff] }
 0x16f   : > { %3586 = vmatpush1.bf16.msk.msra.mxu1 %vm3572_vm6, %v3574_v6  ;;  %1277 = vmatprep.mubr.f32.mxu1 %v4148_v7  ;;  %v3114_v6 = vld [vmem:[%s6054_s4 + $0x250] sm:$0xff] }
 0x170   : > { %3588 = vmatprep.subr.bf16.mxu1 %v3587_v24  ;;  %v3621_v10 = vpack.c.bf16 %v3116_v8, %v3114_v6 }
 0x172   : > { %3080 = vmatmul.mubr.msk.f32.vlgmr.msra.gmra.mrb[10].mxu1 %vm1114_vm7, %v3076_v17  ;;  %v3118_v17 = vld [vmem:[%s6054_s4 + $0x270] sm:$0xff] }
 0x173   : > { %1283 = vmatprep.mubr.f32.mxu1 %v4148_v7  ;;  %3590 = vmatpush1.bf16.msra.mxu1 %v3589_v31 }
 0x174   : > { %3592 = vmatprep.subr.bf16.mxu1 %v3591_v32  ;;  %v1338_v32 = vld [vmem:[%s6054_s4 + $0x8] sm:$0xff] }
 0x175   : > { %v3627_v39 = vpack.c.bf16 %v1340_v36, %v1338_v32  ;;  %v1345_v36 = vld [vmem:[%s6054_s4 + $0x40] sm:$0xff] }
 0x176   : > { %3081 = vmatmul.mubr.msk.f32.gmra.mrb[12].mxu1 %vm1114_vm7, %v3077_v20  ;;  %v3120_v20 = vld [vmem:[%s6054_s4 + $0x280] sm:$0xff] }
 0x177   : > { %3594 = vmatpush1.bf16.msra.mxu1 %v3593_v41  ;;  %v3625_v25 = vpack.c.bf16 %v3120_v20, %v3118_v17 }
 0x178   : > { %3596 = vmatprep.subr.bf16.mxu1 %v3595_v42  ;;  %v1319_v42 = vlaneseq }
 0x17a   : > { %v4945_v43 = vshrl.u32 %v1319_v42, 7 }
 0x17b   : > { %3598 = vmatpush1.bf16.msra.mxu1 %v3597_v49 }
 0x17c   : > { %3600 = vmatprep.subr.bf16.mxu1 %v3599_v51  ;;  %v1325_v44 = vsub.s32 1, %v4945_v43  ;;  %v1321_v49 = vsub.s32 0, %v4945_v43 }
 0x17e   : > { %v1326_v51 = vrot.slane %v1317_v48, %v1325_v44  ;;  %v1322_v52 = vrot.slane %v1317_v48, %v1321_v49  ;;  %v1351_v48 = vld [vmem:[%s6054_s4 + $0x70] sm:$0xff] }
 0x17f   : > { %3602 = vmatpush1.bf16.msra.mxu1 %v3601_v58 }
 0x180   : > { %3604 = vmatprep.subr.bf16.mxu1 %v3603_v59 }
 0x183   : > { %3606 = vmatpush1.bf16.msra.mxu1 %v3605_v0 }
 0x184   : > { %3608 = vmatprep.subr.bf16.mxu1 %v3607_v1  ;;  %v1337_v1 = vld [vmem:[%s6054_s4] sm:$0xff] }
 0x185   : > { %v3629_v22 = vpack.c.bf16 %v1339_v46, %v1337_v1  ;;  %v1362_v1 = vld [vmem:[%s6054_s4 + $0xc8] sm:$0xff] }
 0x187   : > { %3610 = vmatpush1.bf16.msra.mxu1 %v3609_v47  ;;  %v1342_v47 = vld [vmem:[%s6054_s4 + $0x28] sm:$0xff] }
 0x188   : > { %3612 = vmatprep.subr.bf16.mxu1 %v3611_v50  ;;  %v1344_v50 = vld [vmem:[%s6054_s4 + $0x38] sm:$0xff] }
 0x189   : > { %v3631_v34 = vpack.c.bf16 %v1344_v50, %v1342_v47  ;;  %v1361_v50 = vld [vmem:[%s6054_s4 + $0xc0] sm:$0xff] }
 0x18b   : > { %3614 = vmatpush1.bf16.msra.mxu1 %v3613_v18 }
 0x18c   : > { %3616 = vmatprep.subr.bf16.mxu1 %v3615_v40 }
 0x18f   : > { %3618 = vmatpush1.bf16.msra.mxu1 %v3617_v4 }
 0x190   : > { %3620 = vmatprep.subr.bf16.mxu1 %v3619_v38 }
 0x193   : > { %3622 = vmatpush1.bf16.msra.mxu1 %v3621_v10 }
 0x194   : > { %3624 = vmatprep.subr.bf16.mxu1 %v3623_v15 }
 0x197   : > { %3626 = vmatpush1.bf16.msra.mxu1 %v3625_v25  ;;  %v1348_v25 = vld [vmem:[%s6054_s4 + $0x58] sm:$0xff] }
 0x198   : > { %3124 = vmatprep.subr.msk.mxu1 %vm1439_vm8, %v3123_v27 }
 0x19b   : > { %3125 = vmatpush1.msk.msra.mxu1 %vm1439_vm8, %v3122_v28 }
 0x19c   : > { %3628 = vmatprep.subr.bf16.mxu1 %v3627_v39  ;;  %v1352_v39 = vld [vmem:[%s6054_s4 + $0x78] sm:$0xff] }
 0x23d   : > { %v1193_v2 = vpop.f32.mrb[6].mxu1 }
 0x23e   : > { %v1195_v16 = vpop.f32.mrb[7].mxu1 }
 0x241   : > { %v1199_v9 = vpop.f32.mrb[8].mxu1 }
 0x242   : > { %v1201_v12 = vpop.f32.mrb[9].mxu1 }
 0x245   : > { %v1279_v21 = vpop.f32.mrb[10].mxu1 }
 0x246   : > { %v1290_v23 = vmax.f32 %v1193_v2, %v1279_v21  ;;  %v1281_v24 = vpop.f32.mrb[11].mxu1  ;;  %v1346_v21 = vld [vmem:[%s6054_s4 + $0x48] sm:$0xff] }
 0x247   : > { %v1291_v26 = vmax.f32 %v1195_v16, %v1281_v24  ;;  %v3635_v32 = vpack.c.bf16 %v1348_v25, %v1346_v21  ;;  %v1373_v21 = vld [vmem:[%s6054_s4 + $0x120] sm:$0xff]  ;;  %v1375_v25 = vld [vmem:[%s6054_s4 + $0x130] sm:$0xff] }
 0x248   : > { %1298 = vrot.lane.b32.xlu0 %v1290_v23, %s4150_s14 }
 0x249   : > { %v1285_v31 = vpop.f32.mrb[12].mxu1 }
 0x24a   : > { %v1292_v33 = vmax.f32 %v1199_v9, %v1285_v31  ;;  %v1287_v35 = vpop.f32.mrb[13].mxu1 }
 0x24b   : > { %v1293_v41 = vmax.f32 %v1201_v12, %v1287_v35  ;;  %v1341_v12 = vld [vmem:[%s6054_s4 + $0x20] sm:$0xff]  ;;  %v1350_v35 = vld [vmem:[%s6054_s4 + $0x68] sm:$0xff] }
 0x24c   : > { %1300 = vrot.lane.b32.xlu0 %v1291_v26, %s4150_s14  ;;  %1302 = vrot.lane.b32.xlu1 %v1292_v33, %s4150_s14  ;;  %v3633_v28 = vpack.c.bf16 %v1343_v13, %v1341_v12  ;;  %v3639_v42 = vpack.c.bf16 %v1352_v39, %v1350_v35  ;;  %v1374_v12 = vld [vmem:[%s6054_s4 + $0x128] sm:$0xff]  ;;  %v1376_v13 = vld [vmem:[%s6054_s4 + $0x138] sm:$0xff] }
 0x24d   : > { %v3132_v35 = vld [vmem:[%s6054_s4 + $0x2a0] sm:$0xff]  ;;  %v3134_v39 = vld [vmem:[%s6054_s4 + $0x2b0] sm:$0xff] }
 0x250   : > { %1304 = vrot.lane.b32.xlu1 %v1293_v41, %s4150_s14 }
 0x2ba   : > { %v1299_v45 = vpop.permute.xlu0 %1298 }
 0x2be   : > { %v1301_v55 = vpop.permute.xlu0 %1300  ;;  %v1303_v30 = vpop.permute.xlu1 %1302 }
 0x2bf   : > { %v1307_v57 = vsel %vm1306_vm9, %v1299_v45, %v1301_v55  ;;  %v1314_v58 = vmax.f32 %v1291_v26, %v1301_v55  ;;  %v1349_v45 = vld [vmem:[%s6054_s4 + $0x60] sm:$0xff] }
 0x2c0   : > { %v1313_v59 = vmax.f32 %v1290_v23, %v1307_v57  ;;  %v3641_v55 = vpack.c.bf16 %v1351_v48, %v1349_v45  ;;  %v1353_v57 = vld [vmem:[%s6054_s4 + $0x80] sm:$0xff] }
 0x2c1   : > { %v1330_v60 = vadd.f32 %v1326_v51, %v1314_v58  ;;  %v1355_v58 = vld [vmem:[%s6054_s4 + $0x90] sm:$0xff]  ;;  %v1377_v45 = vld [vmem:[%s6054_s4 + $0x140] sm:$0x3] }
 0x2c2   : > { %v1329_v61 = vadd.f32 %v1322_v52, %v1313_v59  ;;  %v1305_v62 = vpop.permute.xlu1 %1304  ;;  %v1358_v59 = vld [vmem:[%s6054_s4 + $0xa8] sm:$0xff] }
 0x2c3   : > { %v1308_v63 = vsel %vm1306_vm9, %v1303_v30, %v1305_v62  ;;  %v1316_v0 = vmax.f32 %v1293_v41, %v1305_v62  ;;  %v4961_v5 = vmax.f32 %v1330_v60, 0.0  ;;  %v1360_v60 = vld [vmem:[%s6054_s4 + $0xb8] sm:$0xff] }
 0x2c4   : > { %v4959_v3 = vmax.f32 %v1329_v61, 0.0  ;;  %v1315_v37 = vmax.f32 %v1292_v33, %v1308_v63  ;;  %v1347_v33 = vld [vmem:[%s6054_s4 + $0x50] sm:$0xff]  ;;  %v3645_v61 = vpack.c.bf16 %v1355_v58, %v1353_v57  ;;  %v3647_v62 = vpack.c.bf16 %v1360_v60, %v1358_v59  ;;  %v1357_v63 = vld [vmem:[%s6054_s4 + $0xa0] sm:$0xff]  ;;  %v3141_v57 = vld [vmem:[%s6054_s4 + $0x2e8] sm:$0xff] }
 0x2c5   : > { %v1332_v54 = vadd.f32 %v1326_v51, %v1316_v0  ;;  %v1429_v53 = vrot.slane %v4961_v5, 1  ;;  %v1798_v2 = vrot.slane %v4961_v5, 3  ;;  %v1940_v9 = vrot.slane %v4961_v5, 4  ;;  %v1354_v51 = vld [vmem:[%s6054_s4 + $0x88] sm:$0xff]  ;;  %v1359_v0 = vld [vmem:[%s6054_s4 + $0xb0] sm:$0xff]  ;;  %v3143_v58 = vld [vmem:[%s6054_s4 + $0x2f8] sm:$0xff] }
 0x2c6   : > { %v1331_v11 = vadd.f32 %v1322_v52, %v1315_v37  ;;  %v1426_v56 = vrot.slane %v4959_v3, 1  ;;  %v1653_v16 = vrot.slane %v4959_v3, 2  ;;  %v1795_v29 = vrot.slane %v4959_v3, 3  ;;  %v1356_v52 = vld [vmem:[%s6054_s4 + $0x98] sm:$0xff] }
 0x2c7   : > { %v4972_v18 = vmax.f32 %v1332_v54, 0.0  ;;  %v1937_v17 = vrot.slane %v4959_v3, 4  ;;  %v3637_v41 = vpack.c.bf16 %v1347_v33, %v1345_v36  ;;  %v3643_v30 = vpack.c.bf16 %v1356_v52, %v1354_v51  ;;  %v1364_v37 = vld [vmem:[%s6054_s4 + $0xd8] sm:$0xff]  ;;  %v1363_v54 = vld [vmem:[%s6054_s4 + $0xd0] sm:$0xff]  ;;  %v3133_v36 = vld [vmem:[%s6054_s4 + $0x2a8] sm:$0xff] }
 0x2c8   : > { %v4974_v40 = vmax.f32 %v1331_v11, 0.0  ;;  %v3649_v46 = vpack.c.bf16 %v1359_v0, %v1357_v63  ;;  %v3651_v47 = vpack.c.bf16 %v1364_v37, %v1362_v1  ;;  %v1366_v11 = vld [vmem:[%s6054_s4 + $0xe8] sm:$0xff]  ;;  %v3135_v33 = vld [vmem:[%s6054_s4 + $0x2b8] sm:$0xff]  ;;  %v3669_v51 = vpack.c.bf16 %v3134_v39, %v3132_v35  ;;  %v3140_v63 = vld [vmem:[%s6054_s4 + $0x2e0] sm:$0xff] }
 0x2c9   : > { %v1430_v4 = vrot.slane %v4972_v18, 1  ;;  %v1799_v19 = vrot.slane %v4972_v18, 3  ;;  %v1941_v15 = vrot.slane %v4972_v18, 4  ;;  %v3667_v48 = vpack.c.bf16 %v3135_v33, %v3133_v36  ;;  %v3145_v0 = vld [vmem:[%s6054_s4 + $0x308] sm:$0xff]  ;;  %v3147_v1 = vld [vmem:[%s6054_s4 + $0x318] sm:$0xff]  ;;  %v3160_v33 = vld [vmem:[%s6054_s4 + $0x380] sm:$0xff] }
 0x2ca   : > { %v1427_v38 = vrot.slane %v4974_v40, 1  ;;  %v1654_v6 = vrot.slane %v4974_v40, 2  ;;  %v1796_v8 = vrot.slane %v4974_v40, 3  ;;  %v1938_v26 = vrot.slane %v4974_v40, 4  ;;  %v3162_v35 = vld [vmem:[%s6054_s4 + $0x390] sm:$0xff]  ;;  %v3165_v39 = vld [vmem:[%s6054_s4 + $0x3a8] sm:$0xff] }
 0x2cb   : > { %v1431_v10 = vsel %vm495_vm2, %v1429_v53, %v1430_v4  ;;  %v4997_v14 = vsel %vm861_vm0, %v1798_v2, %v1799_v19  ;;  %v5023_v27 = vsel %vm999_vm1, %v1940_v9, %v1941_v15  ;;  %v1367_v2 = vld [vmem:[%s6054_s4 + $0xf0] sm:$0xff]  ;;  %v1369_v9 = vld [vmem:[%s6054_s4 + $0x100] sm:$0xff]  ;;  %v1657_v59 = vrot.slane %v4972_v18, 2 }
 0x2cc   : > { %3126 = vmatprep.mubr.msk.f32.mxu1 %vm1434_vm10, %v1431_v10  ;;  %v1428_v20 = vsel %vm495_vm2, %v1426_v56, %v1427_v38  ;;  %v5012_v23 = vsel %vm723_vm4, %v1653_v16, %v1654_v6  ;;  %v5017_v24 = vsel %vm861_vm0, %v1795_v29, %v1796_v8  ;;  %v5029_v31 = vsel %vm999_vm1, %v1937_v17, %v1938_v26  ;;  %v1365_v56 = vld [vmem:[%s6054_s4 + $0xe0] sm:$0xff]  ;;  %v1372_v16 = vld [vmem:[%s6054_s4 + $0x118] sm:$0xff]  ;;  %v1371_v10 = vld [vmem:[%s6054_s4 + $0x110] sm:$0xff] }
 0x2cd   : > { %1511 = vmatmul.mubr.f32.vlgmr.msra.gmra.mrb[14].mxu1 %v1428_v20  ;;  %v3657_v29 = vpack.c.bf16 %v1367_v2, %v1365_v56  ;;  %v3661_v17 = vpack.c.bf16 %v1371_v10, %v1369_v9  ;;  %v3663_v20 = vpack.c.bf16 %v1376_v13, %v1374_v12  ;;  %v3150_v56 = vld [vmem:[%s6054_s4 + $0x330] sm:$0xff]  ;;  %v3153_v2 = vld [vmem:[%s6054_s4 + $0x348] sm:$0xff]  ;;  %v3159_v12 = vld [vmem:[%s6054_s4 + $0x378] sm:$0xff]  ;;  %vm2716_vm0 = vcmask 982016  }
 0x2ce   : > { %3630 = vmatpush1.bf16.msra.mxu1 %v3629_v22  ;;  %3127 = vmatprep.mubr.msk.f32.mxu1 %vm1434_vm10, %v1430_v4  ;;  %v1368_v22 = vld [vmem:[%s6054_s4 + $0xf8] sm:$0xff]  ;;  %v1370_v4 = vld [vmem:[%s6054_s4 + $0x108] sm:$0xff]  ;;  %v3154_v9 = vld [vmem:[%s6054_s4 + $0x350] sm:$0xff]  ;;  %vm2803_vm2 = vcmask 687104  }
 0x2cf   : > { %3632 = vmatprep.subr.bf16.mxu1 %v3631_v34  ;;  %v3653_v34 = vpack.c.bf16 %v1363_v54, %v1361_v50  ;;  %v3655_v53 = vpack.c.bf16 %v1368_v22, %v1366_v11  ;;  %v3146_v50 = vld [vmem:[%s6054_s4 + $0x310] sm:$0xff]  ;;  %v3149_v54 = vld [vmem:[%s6054_s4 + $0x328] sm:$0xff]  ;;  %v3151_v11 = vld [vmem:[%s6054_s4 + $0x338] sm:$0xff] }
 0x2d0   : > { %v3157_v10 = vld [vmem:[%s6054_s4 + $0x368] sm:$0xff] }
 0x2d1   : > { %1517 = vmatmul.mubr.f32.gmra.mrb[16].mxu1 %v1427_v38  ;;  %v3659_v38 = vpack.c.bf16 %v1372_v16, %v1370_v4  ;;  %v3155_v4 = vld [vmem:[%s6054_s4 + $0x358] sm:$0xff] }
 0x2d2   : > { %3634 = vmatpush1.bf16.msra.mxu1 %v3633_v28  ;;  %3130 = vmatprep.mubr.msk.f32.mxu1 %vm1434_vm10, %v4961_v5  ;;  %v3665_v28 = vpack.c.bf16 %v1375_v25, %v1373_v21  ;;  %v3158_v21 = vld [vmem:[%s6054_s4 + $0x370] sm:$0xff]  ;;  %v3161_v25 = vld [vmem:[%s6054_s4 + $0x388] sm:$0xff] }
 0x2d3   : > { %3636 = vmatprep.subr.bf16.mxu1 %v3635_v32  ;;  %v1378_v32 = vld [vmem:[%s6054_s4 + $0x148] sm:$0x3] }
 0x2d6   : > { %3638 = vmatpush1.bf16.msra.mxu1 %v3637_v41  ;;  %v3137_v41 = vld [vmem:[%s6054_s4 + $0x2c8] sm:$0xff] }
 0x2d7   : > { %3640 = vmatprep.subr.bf16.mxu1 %v3639_v42  ;;  %v3139_v42 = vld [vmem:[%s6054_s4 + $0x2d8] sm:$0xff] }
 0x2d8   : > { %v3671_v52 = vpack.c.bf16 %v3139_v42, %v3137_v41  ;;  %v3167_v41 = vld [vmem:[%s6054_s4 + $0x3b8] sm:$0xff]  ;;  %v3697_v42 = vpack.c.bf16 %v3162_v35, %v3160_v33  ;;  %v3200_v33 = vld [vmem:[%s6054_s4 + $0x4a0] sm:$0xff] }
 0x2d9   : > { %v3203_v35 = vld [vmem:[%s6054_s4 + $0x4b8] sm:$0xff] }
 0x2da   : > { %3642 = vmatpush1.bf16.msra.mxu1 %v3641_v55  ;;  %v3136_v55 = vld [vmem:[%s6054_s4 + $0x2c0] sm:$0xff] }
 0x2db   : > { %3644 = vmatprep.subr.bf16.mxu1 %v3643_v30  ;;  %v3138_v30 = vld [vmem:[%s6054_s4 + $0x2d0] sm:$0xff] }
 0x2dc   : > { %v3673_v60 = vpack.c.bf16 %v3138_v30, %v3136_v55  ;;  %v3171_v55 = vld [vmem:[%s6054_s4 + $0x3d8] sm:$0xff] }
 0x2de   : > { %3646 = vmatpush1.bf16.msra.mxu1 %v3645_v61  ;;  %v1656_v61 = vrot.slane %v4961_v5, 2 }
 0x2df   : > { %3648 = vmatprep.subr.bf16.mxu1 %v3647_v62  ;;  %v3675_v62 = vpack.c.bf16 %v3143_v58, %v3141_v57  ;;  %v3168_v58 = vld [vmem:[%s6054_s4 + $0x3c0] sm:$0xff] }
 0x2e0   : > { %v1658_v5 = vsel %vm723_vm4, %v1656_v61, %v1657_v59 }
 0x2e2   : > { %3650 = vmatpush1.bf16.msra.mxu1 %v3649_v46  ;;  %v3679_v46 = vpack.c.bf16 %v3147_v1, %v3145_v0  ;;  %v3178_v0 = vld [vmem:[%s6054_s4 + $0x3f0] sm:$0xff]  ;;  %v3180_v1 = vld [vmem:[%s6054_s4 + $0x400] sm:$0xff] }
 0x2e3   : > { %3652 = vmatprep.subr.bf16.mxu1 %v3651_v47  ;;  %v3144_v47 = vld [vmem:[%s6054_s4 + $0x300] sm:$0xff] }
 0x2e4   : > { %v3681_v22 = vpack.c.bf16 %v3146_v50, %v3144_v47  ;;  %v3709_v50 = vpack.c.bf16 %v3180_v1, %v3178_v0  ;;  %v3212_v0 = vld [vmem:[%s6054_s4 + $0x500] sm:$0xff]  ;;  %v3215_v1 = vld [vmem:[%s6054_s4 + $0x518] sm:$0xff] }
 0x2e6   : > { %3654 = vmatpush1.bf16.msra.mxu1 %v3653_v34  ;;  %v3683_v34 = vpack.c.bf16 %v3151_v11, %v3149_v54  ;;  %v3182_v11 = vld [vmem:[%s6054_s4 + $0x410] sm:$0xff] }
 0x2e7   : > { %3656 = vmatprep.subr.bf16.mxu1 %v3655_v53  ;;  %v3148_v53 = vld [vmem:[%s6054_s4 + $0x320] sm:$0xff] }
 0x2e8   : > { %v3685_v16 = vpack.c.bf16 %v3150_v56, %v3148_v53  ;;  %v3189_v53 = vld [vmem:[%s6054_s4 + $0x448] sm:$0xff] }
 0x2ea   : > { %3658 = vmatpush1.bf16.msra.mxu1 %v3657_v29  ;;  %v3687_v29 = vpack.c.bf16 %v3155_v4, %v3153_v2  ;;  %v3186_v4 = vld [vmem:[%s6054_s4 + $0x430] sm:$0xff] }
 0x2eb   : > { %3660 = vmatprep.subr.bf16.mxu1 %v3659_v38  ;;  %v3152_v38 = vld [vmem:[%s6054_s4 + $0x340] sm:$0xff] }
 0x2ec   : > { %v3689_v13 = vpack.c.bf16 %v3154_v9, %v3152_v38  ;;  %v3190_v9 = vld [vmem:[%s6054_s4 + $0x450] sm:$0xff] }
 0x2ee   : > { %3662 = vmatpush1.bf16.msra.mxu1 %v3661_v17  ;;  %v3691_v17 = vpack.c.bf16 %v3159_v12, %v3157_v10  ;;  %v3192_v10 = vld [vmem:[%s6054_s4 + $0x460] sm:$0xff]  ;;  %v3195_v12 = vld [vmem:[%s6054_s4 + $0x478] sm:$0xff] }
 0x2ef   : > { %3664 = vmatprep.subr.bf16.mxu1 %v3663_v20  ;;  %v3156_v20 = vld [vmem:[%s6054_s4 + $0x360] sm:$0xff] }
 0x2f2   : > { %3666 = vmatpush1.bf16.msra.mxu1 %v3665_v28  ;;  %v3163_v28 = vld [vmem:[%s6054_s4 + $0x398] sm:$0xff] }
 0x2f3   : > { %3128 = vmatprep.subr.msk.mxu1 %vm1439_vm8, %v1378_v32  ;;  %v3693_v32 = vpack.c.bf16 %v3158_v21, %v3156_v20  ;;  %v3695_v36 = vpack.c.bf16 %v3163_v28, %v3161_v25  ;;  %v3196_v20 = vld [vmem:[%s6054_s4 + $0x480] sm:$0xff]  ;;  %v3199_v21 = vld [vmem:[%s6054_s4 + $0x498] sm:$0xff]  ;;  %v3201_v25 = vld [vmem:[%s6054_s4 + $0x4a8] sm:$0xff] }
 0x2f6   : > { %3129 = vmatpush1.msk.msra.mxu1 %vm1439_vm8, %v1377_v45  ;;  %v3699_v45 = vpack.c.bf16 %v3167_v41, %v3165_v39  ;;  %v3205_v39 = vld [vmem:[%s6054_s4 + $0x4c8] sm:$0xff] }
 0x2f7   : > { %1598 = vmatmul.mubr.f32.vlgmr.msra.gmra.mrb[14].mxu1 %v4959_v3  ;;  %3668 = vmatprep.subr.bf16.mxu1 %v3667_v48  ;;  %v3142_v3 = vld [vmem:[%s6054_s4 + $0x2f0] sm:$0xff]  ;;  %v3164_v48 = vld [vmem:[%s6054_s4 + $0x3a0] sm:$0xff] }
 0x2f8   : > { %3131 = vmatprep.mubr.msk.f32.mxu1 %vm1434_vm10, %v4972_v18  ;;  %3670 = vmatpush1.bf16.msra.mxu1 %v3669_v51  ;;  %v3677_v37 = vpack.c.bf16 %v3142_v3, %v3140_v63  ;;  %v3166_v51 = vld [vmem:[%s6054_s4 + $0x3b0] sm:$0xff]  ;;  %v3179_v63 = vld [vmem:[%s6054_s4 + $0x3f8] sm:$0xff]  ;;  %v3181_v3 = vld [vmem:[%s6054_s4 + $0x408] sm:$0xff] }
 0x2f9   : > { %3672 = vmatprep.subr.bf16.mxu1 %v3671_v52  ;;  %v3169_v52 = vld [vmem:[%s6054_s4 + $0x3c8] sm:$0xff]  ;;  %v3701_v30 = vpack.c.bf16 %v3166_v51, %v3164_v48  ;;  %v3707_v47 = vpack.c.bf16 %v3181_v3, %v3179_v63  ;;  %v3204_v48 = vld [vmem:[%s6054_s4 + $0x4c0] sm:$0xff]  ;;  %v3207_v51 = vld [vmem:[%s6054_s4 + $0x4d8] sm:$0xff] }
 0x2fa   : > { %v3703_v57 = vpack.c.bf16 %v3171_v55, %v3169_v52  ;;  %v3209_v52 = vld [vmem:[%s6054_s4 + $0x4e8] sm:$0xff]  ;;  %v3210_v3 = vld [vmem:[%s6054_s4 + $0x4f0] sm:$0xff]  ;;  %v2036_v18 = vld [vmem:[%s6056_s6] sm:$0x1f] }
 0x2fb   : > { %1604 = vmatmul.mubr.f32.gmra.mrb[16].mxu1 %v4974_v40  ;;  %v3273_v40 = vld [vmem:[%s6056_s6 + $0x8] sm:$0x1f] }
 0x2fc   : > { %3674 = vmatpush1.bf16.msra.mxu1 %v3673_v60  ;;  %3176 = vmatprep.mubr.msk.f32.mxu1 %vm1434_vm10, %v1658_v5  ;;  %v3170_v60 = vld [vmem:[%s6054_s4 + $0x3d0] sm:$0xff]  ;;  %v3183_v5 = vld [vmem:[%s6054_s4 + $0x418] sm:$0xff] }
 0x2fd   : > { %3676 = vmatprep.subr.bf16.mxu1 %v3675_v62  ;;  %v3705_v61 = vpack.c.bf16 %v3170_v60, %v3168_v58  ;;  %v3173_v62 = vld [vmem:[%s6054_s4 + $0x3e8] sm:$0x3]  ;;  %v3208_v58 = vld [vmem:[%s6054_s4 + $0x4e0] sm:$0xff]  ;;  %v3211_v60 = vld [vmem:[%s6054_s4 + $0x4f8] sm:$0xff] }
 0x300   : > { %3678 = vmatpush1.bf16.msra.mxu1 %v3677_v37  ;;  %v3185_v37 = vld [vmem:[%s6054_s4 + $0x428] sm:$0xff] }
 0x301   : > { %3680 = vmatprep.subr.bf16.mxu1 %v3679_v46  ;;  %v3172_v46 = vld [vmem:[%s6054_s4 + $0x3e0] sm:$0x3]  ;;  %v3711_v54 = vpack.c.bf16 %v3185_v37, %v3183_v5  ;;  %v3217_v5 = vld [vmem:[%s6054_s4 + $0x528] sm:$0xff]  ;;  %v3741_v37 = vpack.c.bf16 %v3212_v0, %v3210_v3 }
 0x302   : > { %v3252_v0 = vld [vmem:[%s6054_s4 + $0x620] sm:$0xff] }
 0x304   : > { %3682 = vmatpush1.bf16.msra.mxu1 %v3681_v22  ;;  %v3184_v22 = vld [vmem:[%s6054_s4 + $0x420] sm:$0xff] }
 0x305   : > { %3684 = vmatprep.subr.bf16.mxu1 %v3683_v34  ;;  %v3187_v34 = vld [vmem:[%s6054_s4 + $0x438] sm:$0xff]  ;;  %v3713_v56 = vpack.c.bf16 %v3184_v22, %v3182_v11  ;;  %v3225_v22 = vld [vmem:[%s6054_s4 + $0x548] sm:$0xff] }
 0x306   : > { %v3715_v2 = vpack.c.bf16 %v3189_v53, %v3187_v34  ;;  %v3219_v11 = vld [vmem:[%s6054_s4 + $0x538] sm:$0x3]  ;;  %v3224_v53 = vld [vmem:[%s6054_s4 + $0x540] sm:$0xff] }
 0x307   : > { %v3227_v34 = vld [vmem:[%s6054_s4 + $0x558] sm:$0xff] }
 0x308   : > { %3686 = vmatpush1.bf16.msra.mxu1 %v3685_v16  ;;  %v3188_v16 = vld [vmem:[%s6054_s4 + $0x440] sm:$0xff] }
 0x309   : > { %3688 = vmatprep.subr.bf16.mxu1 %v3687_v29  ;;  %v3717_v29 = vpack.c.bf16 %v3188_v16, %v3186_v4  ;;  %v3231_v4 = vld [vmem:[%s6054_s4 + $0x578] sm:$0xff]  ;;  %v3218_v16 = vld [vmem:[%s6054_s4 + $0x530] sm:$0x3] }
 0x30c   : > { %3690 = vmatpush1.bf16.msra.mxu1 %v3689_v13 }
 0x30d   : > { %3692 = vmatprep.subr.bf16.mxu1 %v3691_v17  ;;  %v3194_v17 = vld [vmem:[%s6054_s4 + $0x470] sm:$0xff] }
 0x30e   : > { %v3725_v28 = vpack.c.bf16 %v3196_v20, %v3194_v17  ;;  %v3234_v17 = vld [vmem:[%s6054_s4 + $0x590] sm:$0xff] }
 0x310   : > { %3694 = vmatpush1.bf16.msra.mxu1 %v3693_v32  ;;  %v3727_v32 = vpack.c.bf16 %v3201_v25, %v3199_v21  ;;  %v3236_v25 = vld [vmem:[%s6054_s4 + $0x5a0] sm:$0xff] }
 0x311   : > { %3696 = vmatprep.subr.bf16.mxu1 %v3695_v36  ;;  %v3198_v36 = vld [vmem:[%s6054_s4 + $0x490] sm:$0xff] }
 0x312   : > { %v3729_v41 = vpack.c.bf16 %v3200_v33, %v3198_v36  ;;  %v3240_v33 = vld [vmem:[%s6054_s4 + $0x5c0] sm:$0xff] }
 0x314   : > { %3698 = vmatpush1.bf16.msra.mxu1 %v3697_v42  ;;  %v3731_v42 = vpack.c.bf16 %v3205_v39, %v3203_v35  ;;  %v3242_v35 = vld [vmem:[%s6054_s4 + $0x5d0] sm:$0xff]  ;;  %v3245_v39 = vld [vmem:[%s6054_s4 + $0x5e8] sm:$0xff] }
 0x315   : > { %3700 = vmatprep.subr.bf16.mxu1 %v3699_v45  ;;  %v3202_v45 = vld [vmem:[%s6054_s4 + $0x4b0] sm:$0xff] }
 0x316   : > { %v3733_v55 = vpack.c.bf16 %v3204_v48, %v3202_v45  ;;  %v3244_v48 = vld [vmem:[%s6054_s4 + $0x5e0] sm:$0xff] }
 0x318   : > { %3702 = vmatpush1.bf16.msra.mxu1 %v3701_v30  ;;  %v3735_v30 = vpack.c.bf16 %v3209_v52, %v3207_v51  ;;  %v3246_v51 = vld [vmem:[%s6054_s4 + $0x5f0] sm:$0xff]  ;;  %v3249_v52 = vld [vmem:[%s6054_s4 + $0x608] sm:$0xff] }
 0x319   : > { %3704 = vmatprep.subr.bf16.mxu1 %v3703_v57  ;;  %v3206_v57 = vld [vmem:[%s6054_s4 + $0x4d0] sm:$0xff] }
 0x31c   : > { %3706 = vmatpush1.bf16.msra.mxu1 %v3705_v61  ;;  %v3213_v61 = vld [vmem:[%s6054_s4 + $0x508] sm:$0xff] }
 0x31d   : > { %3174 = vmatprep.subr.msk.mxu1 %vm1439_vm8, %v3173_v62  ;;  %v3737_v62 = vpack.c.bf16 %v3208_v58, %v3206_v57  ;;  %v3739_v63 = vpack.c.bf16 %v3213_v61, %v3211_v60  ;;  %v3248_v58 = vld [vmem:[%s6054_s4 + $0x600] sm:$0xff]  ;;  %v3250_v60 = vld [vmem:[%s6054_s4 + $0x610] sm:$0xff]  ;;  %v3253_v61 = vld [vmem:[%s6054_s4 + $0x628] sm:$0xff] }
 0x320   : > { %3175 = vmatpush1.msk.msra.mxu1 %vm1439_vm8, %v3172_v46  ;;  %v3743_v46 = vpack.c.bf16 %v3217_v5, %v3215_v1  ;;  %v3254_v1 = vld [vmem:[%s6054_s4 + $0x630] sm:$0xff]  ;;  %v3257_v5 = vld [vmem:[%s6054_s4 + $0x648] sm:$0xff] }
 0x321   : > { %1736 = vmatmul.mubr.f32.vlgmr.msra.gmra.mrb[14].mxu1 %v5012_v23  ;;  %3708 = vmatprep.subr.bf16.mxu1 %v3707_v47  ;;  %v3191_v23 = vld [vmem:[%s6054_s4 + $0x458] sm:$0xff]  ;;  %v3214_v47 = vld [vmem:[%s6054_s4 + $0x510] sm:$0xff] }
 0x322   : > { %3177 = vmatprep.mubr.msk.f32.mxu1 %vm1434_vm10, %v1657_v59  ;;  %3710 = vmatpush1.bf16.msra.mxu1 %v3709_v50  ;;  %v3193_v59 = vld [vmem:[%s6054_s4 + $0x468] sm:$0xff]  ;;  %v3216_v50 = vld [vmem:[%s6054_s4 + $0x520] sm:$0xff] }
 0x323   : > { %3712 = vmatprep.subr.bf16.mxu1 %v3711_v54  ;;  %v3719_v38 = vpack.c.bf16 %v3193_v59, %v3191_v23  ;;  %v3745_v54 = vpack.c.bf16 %v3216_v50, %v3214_v47  ;;  %v3747_v23 = vpack.c.bf16 %v3227_v34, %v3225_v22  ;;  %v3256_v50 = vld [vmem:[%s6054_s4 + $0x640] sm:$0xff]  ;;  %v3263_v22 = vld [vmem:[%s6054_s4 + $0x678] sm:$0xff] }
 0x325   : > { %1742 = vmatmul.mubr.f32.gmra.mrb[16].mxu1 %v1654_v6  ;;  %v3197_v6 = vld [vmem:[%s6054_s4 + $0x488] sm:$0xff] }
 0x326   : > { %3714 = vmatpush1.bf16.msra.mxu1 %v3713_v56  ;;  %3222 = vmatprep.mubr.msk.f32.mxu1 %vm1434_vm10, %v4997_v14  ;;  %v3721_v14 = vpack.c.bf16 %v3192_v10, %v3190_v9  ;;  %v3723_v13 = vpack.c.bf16 %v3197_v6, %v3195_v12  ;;  %v3226_v56 = vld [vmem:[%s6054_s4 + $0x550] sm:$0xff]  ;;  %v3233_v10 = vld [vmem:[%s6054_s4 + $0x588] sm:$0xff]  ;;  %v3235_v12 = vld [vmem:[%s6054_s4 + $0x598] sm:$0xff] }
 0x327   : > { %3716 = vmatprep.subr.bf16.mxu1 %v3715_v2  ;;  %v3229_v2 = vld [vmem:[%s6054_s4 + $0x568] sm:$0xff]  ;;  %v3749_v59 = vpack.c.bf16 %v3226_v56, %v3224_v53  ;;  %v3230_v9 = vld [vmem:[%s6054_s4 + $0x570] sm:$0xff]  ;;  %v3260_v56 = vld [vmem:[%s6054_s4 + $0x660] sm:$0xff] }
 0x32a   : > { %3718 = vmatpush1.bf16.msra.mxu1 %v3717_v29  ;;  %v3751_v29 = vpack.c.bf16 %v3231_v4, %v3229_v2  ;;  %v3262_v2 = vld [vmem:[%s6054_s4 + $0x670] sm:$0xff] }
 0x32b   : > { %3720 = vmatprep.subr.bf16.mxu1 %v3719_v38  ;;  %v3228_v38 = vld [vmem:[%s6054_s4 + $0x560] sm:$0xff]  ;;  %v3785_v4 = vpack.c.bf16 %v3262_v2, %v3260_v56  ;;  %v3281_v56 = vld [vmem:[%s6057_s7 + $0xa8] sm:$0xff] }
 0x32c   : > { %v3753_v6 = vpack.c.bf16 %v3230_v9, %v3228_v38 }
 0x32e   : > { %3722 = vmatpush1.bf16.msra.mxu1 %v3721_v14  ;;  %v3755_v14 = vpack.c.bf16 %v3235_v12, %v3233_v10 }
 0x32f   : > { %3724 = vmatprep.subr.bf16.mxu1 %v3723_v13  ;;  %v3232_v13 = vld [vmem:[%s6054_s4 + $0x580] sm:$0xff] }
 0x330   : > { %v3757_v20 = vpack.c.bf16 %v3234_v17, %v3232_v13  ;;  %v2228_v13 = vld [vmem:[%s6057_s7 + $0x18] sm:$0xff] }
 0x332   : > { %3726 = vmatpush1.bf16.msra.mxu1 %v3725_v28  ;;  %v3238_v28 = vld [vmem:[%s6054_s4 + $0x5b0] sm:$0xff] }
 0x333   : > { %3728 = vmatprep.subr.bf16.mxu1 %v3727_v32  ;;  %v3241_v32 = vld [vmem:[%s6054_s4 + $0x5c8] sm:$0xff] }
 0x336   : > { %3730 = vmatpush1.bf16.msra.mxu1 %v3729_v41  ;;  %v3247_v41 = vld [vmem:[%s6054_s4 + $0x5f8] sm:$0xff] }
 0x337   : > { %3732 = vmatprep.subr.bf16.mxu1 %v3731_v42  ;;  %v3765_v42 = vpack.c.bf16 %v3242_v35, %v3240_v33  ;;  %v3767_v45 = vpack.c.bf16 %v3247_v41, %v3245_v39  ;;  %v2236_v33 = vld [vmem:[%s6057_s7 + $0x58] sm:$0xff]  ;;  %v2237_v39 = vld [vmem:[%s6057_s7 + $0x60] sm:$0xff]  ;;  %v2238_v41 = vld [vmem:[%s6057_s7 + $0x68] sm:$0xff] }
 0x33a   : > { %3734 = vmatpush1.bf16.msra.mxu1 %v3733_v55  ;;  %v3251_v55 = vld [vmem:[%s6054_s4 + $0x618] sm:$0xff] }
 0x33b   : > { %3736 = vmatprep.subr.bf16.mxu1 %v3735_v30  ;;  %v3769_v30 = vpack.c.bf16 %v3246_v51, %v3244_v48  ;;  %v3771_v57 = vpack.c.bf16 %v3251_v55, %v3249_v52  ;;  %v2240_v48 = vld [vmem:[%s6057_s7 + $0x78] sm:$0xff]  ;;  %v2241_v52 = vld [vmem:[%s6057_s7 + $0x80] sm:$0xff]  ;;  %v2242_v55 = vld [vmem:[%s6057_s7 + $0x88] sm:$0xff] }
 0x33e   : > { %3738 = vmatpush1.bf16.msra.mxu1 %v3737_v62  ;;  %v3255_v62 = vld [vmem:[%s6054_s4 + $0x638] sm:$0xff] }
 0x33f   : > { %3740 = vmatprep.subr.bf16.mxu1 %v3739_v63  ;;  %v3773_v63 = vpack.c.bf16 %v3250_v60, %v3248_v58  ;;  %v3775_v3 = vpack.c.bf16 %v3255_v62, %v3253_v61 }
 0x342   : > { %3742 = vmatpush1.bf16.msra.mxu1 %v3741_v37  ;;  %v3259_v37 = vld [vmem:[%s6054_s4 + $0x658] sm:$0xff] }
 0x343   : > { %3744 = vmatprep.subr.bf16.mxu1 %v3743_v46  ;;  %v3777_v46 = vpack.c.bf16 %v3254_v1, %v3252_v0  ;;  %v3779_v47 = vpack.c.bf16 %v3259_v37, %v3257_v5 }
 0x346   : > { %3746 = vmatpush1.bf16.msra.mxu1 %v3745_v54  ;;  %v3258_v54 = vld [vmem:[%s6054_s4 + $0x650] sm:$0xff] }
 0x347   : > { %3220 = vmatprep.subr.msk.mxu1 %vm1439_vm8, %v3219_v11  ;;  %v3261_v11 = vld [vmem:[%s6054_s4 + $0x668] sm:$0xff]  ;;  %v3781_v34 = vpack.c.bf16 %v3258_v54, %v3256_v50  ;;  %v3278_v54 = vld [vmem:[%s6057_s7 + $0x90] sm:$0xff] }
 0x348   : > { %v3783_v53 = vpack.c.bf16 %v3263_v22, %v3261_v11  ;;  %v3279_v11 = vld [vmem:[%s6057_s7 + $0x98] sm:$0xff] }
 0x34a   : > { %3221 = vmatpush1.msk.msra.mxu1 %vm1439_vm8, %v3218_v16  ;;  %v3265_v16 = vld [vmem:[%s6054_s4 + $0x688] sm:$0x3] }
 0x34b   : > { %1878 = vmatmul.mubr.f32.vlgmr.msra.gmra.mrb[14].mxu1 %v5017_v24  ;;  %3748 = vmatprep.subr.bf16.mxu1 %v3747_v23  ;;  %v3237_v24 = vld [vmem:[%s6054_s4 + $0x5a8] sm:$0xff]  ;;  %v3264_v23 = vld [vmem:[%s6054_s4 + $0x680] sm:$0x3] }
 0x34c   : > { %3223 = vmatprep.mubr.msk.f32.mxu1 %vm1434_vm10, %v1799_v19  ;;  %3750 = vmatpush1.bf16.msra.mxu1 %v3749_v59  ;;  %v3239_v19 = vld [vmem:[%s6054_s4 + $0x5b8] sm:$0xff] }
 0x34d   : > { %3752 = vmatprep.subr.bf16.mxu1 %v3751_v29  ;;  %v3759_v21 = vpack.c.bf16 %v3239_v19, %v3237_v24  ;;  %v2229_v24 = vld [vmem:[%s6057_s7 + $0x20] sm:$0xff]  ;;  %v2230_v19 = vld [vmem:[%s6057_s7 + $0x28] sm:$0xff] }
 0x34f   : > { %1884 = vmatmul.mubr.f32.gmra.mrb[16].mxu1 %v1796_v8  ;;  %v3243_v8 = vld [vmem:[%s6054_s4 + $0x5d8] sm:$0xff] }
 0x350   : > { %3754 = vmatpush1.bf16.msra.mxu1 %v3753_v6  ;;  %3268 = vmatprep.mubr.msk.f32.mxu1 %vm1434_vm10, %v5023_v27  ;;  %v3761_v27 = vpack.c.bf16 %v3238_v28, %v3236_v25  ;;  %v3763_v36 = vpack.c.bf16 %v3243_v8, %v3241_v32  ;;  %v4151_v6 = vmov 0.0|0.0   ;;  %v2232_v25 = vld [vmem:[%s6057_s7 + $0x38] sm:$0xff]  ;;  %v2233_v32 = vld [vmem:[%s6057_s7 + $0x40] sm:$0xff]  ;;  %v2234_v8 = vld [vmem:[%s6057_s7 + $0x48] sm:$0xff] }
 0x351   : > { %3756 = vmatprep.subr.bf16.mxu1 %v3755_v14 }
 0x354   : > { %3758 = vmatpush1.bf16.msra.mxu1 %v3757_v20  ;;  %v3806_v20 = vpack.c.bf16 %v2230_v19, %v2229_v24  ;;  %v2703_v24 = vld [vmem:[%s6059_s9 + $0x18] sm:$0xff]  ;;  %v3290_v19 = vld [vmem:[%s6057_s7 + $0xf0] sm:$0xff] }
 0x355   : > { %3760 = vmatprep.subr.bf16.mxu1 %v3759_v21  ;;  %v2231_v21 = vld [vmem:[%s6057_s7 + $0x30] sm:$0xff] }
 0x356   : > { %v3809_v28 = vpack.c.bf16 %v2232_v25, %v2231_v21  ;;  %v2704_v25 = vld [vmem:[%s6059_s9 + $0x20] sm:$0xff] }
 0x358   : > { %3762 = vmatpush1.bf16.msra.mxu1 %v3761_v27  ;;  %v3812_v27 = vpack.c.bf16 %v2234_v8, %v2233_v32  ;;  %v3292_v8 = vld [vmem:[%s6057_s7 + $0x100] sm:$0xff] }
 0x359   : > { %3764 = vmatprep.subr.bf16.mxu1 %v3763_v36  ;;  %v2235_v36 = vld [vmem:[%s6057_s7 + $0x50] sm:$0xff] }
 0x35a   : > { %v3815_v35 = vpack.c.bf16 %v2236_v33, %v2235_v36  ;;  %v2706_v33 = vld [vmem:[%s6059_s9 + $0x30] sm:$0xff] }
 0x35c   : > { %3766 = vmatpush1.bf16.msra.mxu1 %v3765_v42  ;;  %v3818_v42 = vpack.c.bf16 %v2238_v41, %v2237_v39  ;;  %v3294_v41 = vld [vmem:[%s6057_s7 + $0x110] sm:$0xff] }
 0x35d   : > { %3768 = vmatprep.subr.bf16.mxu1 %v3767_v45  ;;  %v2239_v45 = vld [vmem:[%s6057_s7 + $0x70] sm:$0xff] }
 0x35e   : > { %v3821_v51 = vpack.c.bf16 %v2240_v48, %v2239_v45  ;;  %v2708_v48 = vld [vmem:[%s6059_s9 + $0x40] sm:$0xff] }
 0x360   : > { %3770 = vmatpush1.bf16.msra.mxu1 %v3769_v30  ;;  %v3824_v30 = vpack.c.bf16 %v2242_v55, %v2241_v52  ;;  %v3297_v55 = vld [vmem:[%s6057_s7 + $0x120] sm:$0xff] }
 0x361   : > { %3772 = vmatprep.subr.bf16.mxu1 %v3771_v57 }
 0x364   : > { %3774 = vmatpush1.bf16.msra.mxu1 %v3773_v63 }
 0x365   : > { %3776 = vmatprep.subr.bf16.mxu1 %v3775_v3  ;;  %v2208_v3 = vld [vmem:[%s6055_s5] sm:$0x3] }
 0x366   : > { %v2217_v1 = vrot.slane %v2208_v3, %v1325_v44  ;;  %v2213_v5 = vrot.slane %v2208_v3, %v1321_v49  ;;  %v3827_v44 = vpack.c.bf16 %v3279_v11, %v3278_v54  ;;  %v3280_v49 = vld [vmem:[%s6057_s7 + $0xa0] sm:$0xff]  ;;  %v3300_v3 = vld [vmem:[%s6057_s7 + $0x138] sm:$0xff] }
 0x367   : > { %v3304_v54 = vld [vmem:[%s6057_s7 + $0x158] sm:$0xff] }
 0x368   : > { %3778 = vmatpush1.bf16.msra.mxu1 %v3777_v46 }
 0x369   : > { %3780 = vmatprep.subr.bf16.mxu1 %v3779_v47 }
 0x36c   : > { %3782 = vmatpush1.bf16.msra.mxu1 %v3781_v34 }
 0x36d   : > { %3784 = vmatprep.subr.bf16.mxu1 %v3783_v53 }
 0x370   : > { %3786 = vmatpush1.bf16.msra.mxu1 %v3785_v4  ;;  %v3830_v4 = vpack.c.bf16 %v3281_v56, %v3280_v49  ;;  %v3307_v49 = vld [vmem:[%s6057_s7 + $0x170] sm:$0xff]  ;;  %v3308_v56 = vld [vmem:[%s6057_s7 + $0x178] sm:$0xff] }
 0x371   : > { %3266 = vmatprep.subr.msk.mxu1 %vm1439_vm8, %v3265_v16  ;;  %v3282_v16 = vld [vmem:[%s6057_s7 + $0xb0] sm:$0xff] }
 0x374   : > { %3267 = vmatpush1.msk.msra.mxu1 %vm1439_vm8, %v3264_v23  ;;  %v3283_v23 = vld [vmem:[%s6057_s7 + $0xb8] sm:$0xff] }
 0x375   : > { %2020 = vmatmul.mubr.f32.vlgmr.msra.gmra.mrb[14].mxu1 %v5029_v31  ;;  %v2227_v31 = vld [vmem:[%s6057_s7 + $0x10] sm:$0xff]  ;;  %3934 = vmatprep.subr.bf16.mxu1 %v4151_v6 }
 0x376   : > { %3269 = vmatprep.mubr.msk.f32.mxu1 %vm1434_vm10, %v1941_v15  ;;  %v2225_v15 = vld [vmem:[%s6057_s7] sm:$0xff]  ;;  %v3803_v17 = vpack.c.bf16 %v2228_v13, %v2227_v31  ;;  %v2701_v31 = vld [vmem:[%s6059_s9 + $0x8] sm:$0xff] }
 0x379   : > { %2026 = vmatmul.mubr.f32.gmra.mrb[16].mxu1 %v1938_v26  ;;  %v2226_v26 = vld [vmem:[%s6057_s7 + $0x8] sm:$0xff] }
 0x37a   : > { %v3800_v14 = vpack.c.bf16 %v2226_v26, %v2225_v15  ;;  %v3289_v15 = vld [vmem:[%s6057_s7 + $0xe8] sm:$0xff]  ;;  %v2700_v26 = vld [vmem:[%s6059_s9] sm:$0xff]  ;;  %3419 = vmatprep.mubr.msk.f32.mxu1 %vm4153_vm15, %v4148_v7 }
 0x448   : > { %v2021_v59 = vpop.f32.mrb[14].mxu1 }
 0x449   : > { %v2023_v29 = vpop.f32.mrb[15].mxu1 }
 0x44c   : > { %v2027_v38 = vpop.f32.mrb[16].mxu1 }
 0x44d   : > { %v3790_v9 = vpack.c.bf16 %v2027_v38, %v2021_v59  ;;  %v2029_v10 = vpop.f32.mrb[17].mxu1  ;;  %v3833_v59 = vpack.c.bf16 %v3283_v23, %v3282_v16  ;;  %v3285_v38 = vld [vmem:[%s6057_s7 + $0xc8] sm:$0xff] }
 0x44e   : > { %v3787_v12 = vpack.c.bf16 %v2029_v10, %v2023_v29  ;;  %v3284_v29 = vld [vmem:[%s6057_s7 + $0xc0] sm:$0xff]  ;;  %v3286_v10 = vld [vmem:[%s6057_s7 + $0xd0] sm:$0xff]  ;;  %v3310_v16 = vld [vmem:[%s6057_s7 + $0x188] sm:$0xff] }
 0x450   : > { %3789 = vmatprep.subr.msk.bf16.mxu0 %vm3788_vm11, %v3787_v12 }
 0x451   : > { %3792 = vmatpush1.bf16.msk.msra.mxu0 %vm3788_vm11, %v3790_v9 }
 0x452   : > { %3795 = vmatprep.subr.msk.bf16.mxu0 %vm3788_vm11, %v3787_v12  ;;  %v3287_v12 = vld [vmem:[%s6057_s7 + $0xd8] sm:$0xff] }
 0x454   : > { %3272 = vmatmul.mubr.msk.f32.vlgmr.msra.gmra.mrb[8].mxu0 %vm2037_vm12, %v2036_v18  ;;  %v3839_v18 = vpack.c.bf16 %v3287_v12, %v3286_v10  ;;  %v3314_v10 = vld [vmem:[%s6057_s7 + $0x1a8] sm:$0xff] }
 0x455   : > { %3798 = vmatpush1.bf16.msk.msra.mxu0 %vm3788_vm11, %v3790_v9  ;;  %2187 = vmatprep.mubr.f32.mxu0 %v4148_v7  ;;  %v3836_v9 = vpack.c.bf16 %v3285_v38, %v3284_v29  ;;  %v3312_v29 = vld [vmem:[%s6057_s7 + $0x198] sm:$0xff] }
 0x456   : > { %3799 = vmatprep.subr.bf16.mxu0 %v4151_v6 }
 0x458   : > { %3276 = vmatmul.mubr.msk.f32.vlgmr.msra.gmra.mrb[10].mxu0 %vm2037_vm12, %v3273_v40  ;;  %v3288_v40 = vld [vmem:[%s6057_s7 + $0xe0] sm:$0xff] }
 0x459   : > { %3801 = vmatpush1.bf16.msra.mxu0 %v3800_v14  ;;  %v2702_v14 = vld [vmem:[%s6059_s9 + $0x10] sm:$0xff]  ;;  %v3842_v13 = vpack.c.bf16 %v3289_v15, %v3288_v40  ;;  %v3317_v40 = vld [vmem:[%s6057_s7 + $0x1b8] sm:$0xff] }
 0x45a   : > { %3802 = vmatprep.subr.bf16.mxu0 %v4151_v6  ;;  %v3938_v21 = vpack.c.bf16 %v2703_v24, %v2702_v14  ;;  %v3319_v14 = vld [vmem:[%s6057_s7 + $0x1c8] sm:$0xff]  ;;  %v3320_v24 = vld [vmem:[%s6057_s7 + $0x1d0] sm:$0xff] }
 0x45d   : > { %3804 = vmatpush1.bf16.msra.mxu0 %v3803_v17  ;;  %v3935_v17 = vpack.c.bf16 %v2701_v31, %v2700_v26  ;;  %v3318_v31 = vld [vmem:[%s6057_s7 + $0x1c0] sm:$0xff] }
 0x45e   : > { %3805 = vmatprep.subr.bf16.mxu0 %v4151_v6 }
 0x45f   : > { %3936 = vmatpush3.bf16.msra.mxu1 %v3935_v17  ;;  %v3884_v17 = vpack.c.bf16 %v3319_v14, %v3318_v31 }
 0x460   : > { %3937 = vmatprep.subr.bf16.mxu1 %v4151_v6 }
 0x461   : > { %3807 = vmatpush1.bf16.msra.mxu0 %v3806_v20  ;;  %v3291_v20 = vld [vmem:[%s6057_s7 + $0xf8] sm:$0xff] }
 0x462   : > { %3808 = vmatprep.subr.bf16.mxu0 %v4151_v6  ;;  %v3845_v32 = vpack.c.bf16 %v3291_v20, %v3290_v19  ;;  %v3321_v19 = vld [vmem:[%s6057_s7 + $0x1d8] sm:$0xff] }
 0x463   : > { %3939 = vmatpush3.bf16.msra.mxu1 %v3938_v21  ;;  %v3887_v20 = vpack.c.bf16 %v3321_v19, %v3320_v24  ;;  %v3322_v21 = vld [vmem:[%s6057_s7 + $0x1e0] sm:$0xff]  ;;  %v2793_v19 = vld [vmem:[%s6061_s11 + $0x10] sm:$0xff] }
 0x464   : > { %3940 = vmatprep.subr.bf16.mxu1 %v4151_v6 }
 0x465   : > { %3810 = vmatpush1.bf16.msra.mxu0 %v3809_v28  ;;  %v2705_v28 = vld [vmem:[%s6059_s9 + $0x28] sm:$0xff] }
 0x466   : > { %3811 = vmatprep.subr.bf16.mxu0 %v4151_v6  ;;  %v3941_v36 = vpack.c.bf16 %v2705_v28, %v2704_v25  ;;  %v3323_v25 = vld [vmem:[%s6057_s7 + $0x1e8] sm:$0xff] }
 0x467   : > { %v3890_v28 = vpack.c.bf16 %v3323_v25, %v3322_v21  ;;  %v2795_v25 = vld [vmem:[%s6061_s11 + $0x20] sm:$0xff] }
 0x468   : > { %3942 = vmatpush3.bf16.msra.mxu1 %v3941_v36  ;;  %v3326_v36 = vld [vmem:[%s6057_s7 + $0x200] sm:$0xff] }
 0x469   : > { %3813 = vmatpush1.bf16.msra.mxu0 %v3812_v27  ;;  %v3293_v27 = vld [vmem:[%s6057_s7 + $0x108] sm:$0xff]  ;;  %3943 = vmatprep.subr.bf16.mxu1 %v4151_v6 }
 0x46a   : > { %3814 = vmatprep.subr.bf16.mxu0 %v4151_v6  ;;  %v3848_v39 = vpack.c.bf16 %v3293_v27, %v3292_v8  ;;  %v3325_v8 = vld [vmem:[%s6057_s7 + $0x1f8] sm:$0xff] }
 0x46d   : > { %3816 = vmatpush1.bf16.msra.mxu0 %v3815_v35  ;;  %v2707_v35 = vld [vmem:[%s6059_s9 + $0x38] sm:$0xff] }
 0x46e   : > { %3817 = vmatprep.subr.bf16.mxu0 %v4151_v6  ;;  %v3944_v45 = vpack.c.bf16 %v2707_v35, %v2706_v33  ;;  %v3327_v33 = vld [vmem:[%s6057_s7 + $0x208] sm:$0xff] }
 0x46f   : > { %v3896_v35 = vpack.c.bf16 %v3327_v33, %v3326_v36  ;;  %v2799_v33 = vld [vmem:[%s6061_s11 + $0x40] sm:$0xff] }
 0x470   : > { %3945 = vmatpush3.bf16.msra.mxu1 %v3944_v45  ;;  %v3330_v45 = vld [vmem:[%s6057_s7 + $0x220] sm:$0xff] }
 0x471   : > { %3819 = vmatpush1.bf16.msra.mxu0 %v3818_v42  ;;  %v3295_v42 = vld [vmem:[%s6057_s7 + $0x118] sm:$0xff]  ;;  %3946 = vmatprep.subr.bf16.mxu1 %v4151_v6 }
 0x472   : > { %3820 = vmatprep.subr.bf16.mxu0 %v4151_v6  ;;  %v3851_v52 = vpack.c.bf16 %v3295_v42, %v3294_v41  ;;  %v3329_v41 = vld [vmem:[%s6057_s7 + $0x218] sm:$0xff] }
 0x475   : > { %3822 = vmatpush1.bf16.msra.mxu0 %v3821_v51  ;;  %v2709_v51 = vld [vmem:[%s6059_s9 + $0x48] sm:$0xff] }
 0x476   : > { %3823 = vmatprep.subr.bf16.mxu0 %v4151_v6 }
 0x479   : > { %3825 = vmatpush1.bf16.msra.mxu0 %v3824_v30  ;;  %v3298_v30 = vld [vmem:[%s6057_s7 + $0x128] sm:$0xff] }
 0x47a   : > { %3826 = vmatprep.subr.bf16.mxu0 %v4151_v6 }
 0x527   : > { %v2113_v57 = vpop.f32.mrb[8].mxu0 }
 0x528   : > { %v2115_v58 = vpop.f32.mrb[9].mxu0 }
 0x52b   : > { %v2189_v60 = vpop.f32.mrb[10].mxu0 }
 0x52c   : > { %v2194_v61 = vmax.f32 %v2113_v57, %v2189_v60  ;;  %v2191_v62 = vpop.f32.mrb[11].mxu0  ;;  %v3947_v57 = vpack.c.bf16 %v2709_v51, %v2708_v48  ;;  %v2711_v60 = vld [vmem:[%s6059_s9 + $0x58] sm:$0xff]  ;;  %v3331_v48 = vld [vmem:[%s6057_s7 + $0x228] sm:$0xff] }
 0x52d   : > { %v2195_v63 = vmax.f32 %v2115_v58, %v2191_v62  ;;  %v2710_v58 = vld [vmem:[%s6059_s9 + $0x50] sm:$0xff]  ;;  %v3902_v51 = vpack.c.bf16 %v3331_v48, %v3330_v45 }
 0x52e   : > { %2198 = vrot.lane.b32.xlu0 %v2194_v61, %s4152_s23  ;;  %3948 = vmatpush3.bf16.msra.mxu1 %v3947_v57  ;;  %v3335_v57 = vld [vmem:[%s6057_s7 + $0x240] sm:$0xff] }
 0x52f   : > { %2200 = vrot.lane.b32.xlu1 %v2195_v63, %s4152_s23  ;;  %3949 = vmatprep.subr.bf16.mxu1 %v4151_v6  ;;  %s4090_s23 = scalar_lea.vmem %s4089_s15, 32 }
 0x530   : > { %p4092_p1 = scmp.lt.s32.totalorder %s4090_s23, %s4084_s20 }
 0x532   : > { %p4093_p2 = por %p4092_p1, %p4091_p0 }
 0x534   : > { %p4094_p3 = pnand %p4093_p2, %p4087_p13 }
 0x5a0   : > { %v2199_v0 = vpop.permute.xlu0 %2198 }
 0x5a1   : > { %v2201_v37 = vpop.permute.xlu1 %2200 }
 0x5a2   : > { %v2203_v46 = vsel %vm2202_vm13, %v2199_v0, %v2201_v37  ;;  %v2207_v47 = vmax.f32 %v2195_v63, %v2201_v37  ;;  %v3299_v63 = vld [vmem:[%s6057_s7 + $0x130] sm:$0xff]  ;;  %v3301_v37 = vld [vmem:[%s6057_s7 + $0x140] sm:$0xff] }
 0x5a3   : > { %v2206_v50 = vmax.f32 %v2194_v61, %v2203_v46  ;;  %v3854_v61 = vpack.c.bf16 %v3298_v30, %v3297_v55  ;;  %v3302_v46 = vld [vmem:[%s6057_s7 + $0x148] sm:$0xff]  ;;  %v3333_v55 = vld [vmem:[%s6057_s7 + $0x238] sm:$0xff] }
 0x5a4   : > { %v2221_v22 = vadd.f32 %v2217_v1, %v2207_v47  ;;  %v3950_v1 = vpack.c.bf16 %v2711_v60, %v2710_v58  ;;  %v3860_v47 = vpack.c.bf16 %v3302_v46, %v3301_v37  ;;  %v3336_v58 = vld [vmem:[%s6057_s7 + $0x248] sm:$0xff]  ;;  %v3342_v46 = vld [vmem:[%s6057_s7 + $0x278] sm:$0xff] }
 0x5a5   : > { %v2220_v34 = vadd.f32 %v2213_v5, %v2206_v50  ;;  %v3857_v5 = vpack.c.bf16 %v3300_v3, %v3299_v63  ;;  %v3303_v50 = vld [vmem:[%s6057_s7 + $0x150] sm:$0xff]  ;;  %v3908_v60 = vpack.c.bf16 %v3336_v58, %v3335_v57  ;;  %v3338_v63 = vld [vmem:[%s6057_s7 + $0x258] sm:$0xff] }
 0x5a6   : > { %v5634_v53 = vmax.f32 %v2221_v22, 0.0  ;;  %3951 = vmatpush3.bf16.msra.mxu1 %v3950_v1  ;;  %v3863_v11 = vpack.c.bf16 %v3304_v54, %v3303_v50  ;;  %v3305_v22 = vld [vmem:[%s6057_s7 + $0x160] sm:$0xff]  ;;  %v3344_v54 = vld [vmem:[%s6057_s7 + $0x288] sm:$0xff] }
 0x5a7   : > { %v5636_v43 = vmax.f32 %v2220_v34, 0.0  ;;  %3952 = vmatprep.subr.bf16.mxu1 %v4151_v6  ;;  %v3306_v34 = vld [vmem:[%s6057_s7 + $0x168] sm:$0xff]  ;;  %v3339_v1 = vld [vmem:[%s6057_s7 + $0x260] sm:$0xff] }
 0x5a8   : > { %3277 = vmatprep.mubr.msk.f32.mxu0 %vm2243_vm14, %v5634_v53  ;;  %v2339_v2 = vrot.slane %v5634_v53, 1  ;;  %v2434_v0 = vrot.slane %v5634_v53, 2  ;;  %v2624_v3 = vrot.slane %v5634_v53, 4  ;;  %v3343_v50 = vld [vmem:[%s6057_s7 + $0x280] sm:$0xff] }
 0x5a9   : > { %2312 = vmatmul.mubr.f32.vlgmr.msra.gmra.mrb[12].mxu0 %v5636_v43  ;;  %v2338_v62 = vrot.slane %v5636_v43, 1  ;;  %v2433_v26 = vrot.slane %v5636_v43, 2 }
 0x5aa   : > { %3828 = vmatpush1.bf16.msra.mxu0 %v3827_v44  ;;  %3296 = vmatprep.mubr.msk.f32.mxu0 %vm2243_vm14, %v2339_v2  ;;  %v3866_v44 = vpack.c.bf16 %v3306_v34, %v3305_v22  ;;  %v3869_v2 = vpack.c.bf16 %v3308_v56, %v3307_v49  ;;  %v3345_v22 = vld [vmem:[%s6057_s7 + $0x290] sm:$0xff]  ;;  %v3346_v34 = vld [vmem:[%s6057_s7 + $0x298] sm:$0xff]  ;;  %v3347_v49 = vld [vmem:[%s6057_s7 + $0x2a0] sm:$0xff] }
 0x5ab   : > { %3829 = vmatprep.subr.bf16.mxu0 %v4151_v6  ;;  %v3348_v56 = vld [vmem:[%s6057_s7 + $0x2a8] sm:$0xff] }
 0x5ae   : > { %3831 = vmatpush1.bf16.msra.mxu0 %v3830_v4  ;;  %v3309_v4 = vld [vmem:[%s6057_s7 + $0x180] sm:$0xff] }
 0x5af   : > { %3832 = vmatprep.subr.bf16.mxu0 %v4151_v6  ;;  %v3872_v23 = vpack.c.bf16 %v3310_v16, %v3309_v4  ;;  %v3349_v4 = vld [vmem:[%s6057_s7 + $0x2b0] sm:$0xff]  ;;  %v3350_v16 = vld [vmem:[%s6057_s7 + $0x2b8] sm:$0xff] }
 0x5b2   : > { %3834 = vmatpush1.bf16.msra.mxu0 %v3833_v59  ;;  %v3311_v59 = vld [vmem:[%s6057_s7 + $0x190] sm:$0xff] }
 0x5b3   : > { %3835 = vmatprep.subr.bf16.mxu0 %v4151_v6  ;;  %v3875_v38 = vpack.c.bf16 %v3312_v29, %v3311_v59  ;;  %v3351_v59 = vld [vmem:[%s6057_s7 + $0x2c0] sm:$0xff]  ;;  %v3352_v29 = vld [vmem:[%s6057_s7 + $0x2c8] sm:$0xff] }
 0x5b6   : > { %3837 = vmatpush1.bf16.msra.mxu0 %v3836_v9  ;;  %v3313_v9 = vld [vmem:[%s6057_s7 + $0x1a0] sm:$0xff] }
 0x5b7   : > { %3838 = vmatprep.subr.bf16.mxu0 %v4151_v6  ;;  %v3878_v12 = vpack.c.bf16 %v3314_v10, %v3313_v9  ;;  %v2623_v9 = vrot.slane %v5636_v43, 4  ;;  %v2712_v10 = vld [vmem:[%s6059_s9 + $0x60] sm:$0xff] }
 0x5ba   : > { %3840 = vmatpush1.bf16.msra.mxu0 %v3839_v18  ;;  %v3316_v18 = vld [vmem:[%s6057_s7 + $0x1b0] sm:$0xff] }
 0x5bb   : > { %3841 = vmatprep.subr.bf16.mxu0 %v4151_v6  ;;  %v3881_v15 = vpack.c.bf16 %v3317_v40, %v3316_v18  ;;  %v2714_v40 = vld [vmem:[%s6059_s9 + $0x70] sm:$0xff] }
 0x5be   : > { %3843 = vmatpush1.bf16.msra.mxu0 %v3842_v13  ;;  %v2529_v13 = vrot.slane %v5634_v53, 3  ;;  %v3341_v53 = vld [vmem:[%s6057_s7 + $0x270] sm:$0xff] }
 0x5bf   : > { %3844 = vmatprep.subr.bf16.mxu0 %v4151_v6 }
 0x5c2   : > { %3846 = vmatpush1.bf16.msra.mxu0 %v3845_v32  ;;  %v3324_v32 = vld [vmem:[%s6057_s7 + $0x1f0] sm:$0xff] }
 0x5c3   : > { %3847 = vmatprep.subr.bf16.mxu0 %v4151_v6  ;;  %v3893_v27 = vpack.c.bf16 %v3325_v8, %v3324_v32  ;;  %v2797_v8 = vld [vmem:[%s6061_s11 + $0x30] sm:$0xff] }
 0x5c6   : > { %3849 = vmatpush1.bf16.msra.mxu0 %v3848_v39  ;;  %v3328_v39 = vld [vmem:[%s6057_s7 + $0x210] sm:$0xff] }
 0x5c7   : > { %3850 = vmatprep.subr.bf16.mxu0 %v4151_v6  ;;  %v3899_v42 = vpack.c.bf16 %v3329_v41, %v3328_v39  ;;  %v2801_v41 = vld [vmem:[%s6061_s11 + $0x50] sm:$0xf] }
 0x5ca   : > { %3852 = vmatpush1.bf16.msra.mxu0 %v3851_v52  ;;  %v3332_v52 = vld [vmem:[%s6057_s7 + $0x230] sm:$0xff] }
 0x5cb   : > { %3853 = vmatprep.subr.bf16.mxu0 %v4151_v6  ;;  %v3905_v30 = vpack.c.bf16 %v3333_v55, %v3332_v52 }
 0x5cd   : > { %2408 = vmatmul.mubr.f32.vlgmr.msra.gmra.mrb[12].mxu0 %v2338_v62  ;;  %v3337_v62 = vld [vmem:[%s6057_s7 + $0x250] sm:$0xff] }
 0x5ce   : > { %3855 = vmatpush1.bf16.msra.mxu0 %v3854_v61  ;;  %3315 = vmatprep.mubr.msk.f32.mxu0 %vm2243_vm14, %v2434_v0  ;;  %v2528_v61 = vrot.slane %v5636_v43, 3  ;;  %v3911_v0 = vpack.c.bf16 %v3338_v63, %v3337_v62  ;;  %v2224_v43 = vld [vmem:[%s6058_s8] sm:$0x1] }
 0x5cf   : > { %3856 = vmatprep.subr.bf16.mxu0 %v4151_v6 }
 0x5d2   : > { %3858 = vmatpush1.bf16.msra.mxu0 %v3857_v5  ;;  %v3340_v5 = vld [vmem:[%s6057_s7 + $0x268] sm:$0xff] }
 0x5d3   : > { %3859 = vmatprep.subr.bf16.mxu0 %v4151_v6  ;;  %v3914_v37 = vpack.c.bf16 %v3340_v5, %v3339_v1 }
 0x5d6   : > { %3861 = vmatpush1.bf16.msra.mxu0 %v3860_v47  ;;  %v3917_v47 = vpack.c.bf16 %v3342_v46, %v3341_v53 }
 0x5d7   : > { %3862 = vmatprep.subr.bf16.mxu0 %v4151_v6 }
 0x5da   : > { %3864 = vmatpush1.bf16.msra.mxu0 %v3863_v11  ;;  %v3920_v11 = vpack.c.bf16 %v3344_v54, %v3343_v50 }
 0x5db   : > { %3865 = vmatprep.subr.bf16.mxu0 %v4151_v6 }
 0x5de   : > { %3867 = vmatpush1.bf16.msra.mxu0 %v3866_v44  ;;  %v3923_v44 = vpack.c.bf16 %v3346_v34, %v3345_v22 }
 0x5df   : > { %3868 = vmatprep.subr.bf16.mxu0 %v4151_v6 }
 0x5e2   : > { %3870 = vmatpush1.bf16.msra.mxu0 %v3869_v2  ;;  %v3926_v2 = vpack.c.bf16 %v3348_v56, %v3347_v49 }
 0x5e3   : > { %3871 = vmatprep.subr.bf16.mxu0 %v4151_v6 }
 0x5e6   : > { %3873 = vmatpush1.bf16.msra.mxu0 %v3872_v23  ;;  %v3929_v23 = vpack.c.bf16 %v3350_v16, %v3349_v4 }
 0x5e7   : > { %3874 = vmatprep.subr.bf16.mxu0 %v4151_v6 }
 0x5ea   : > { %3876 = vmatpush1.bf16.msra.mxu0 %v3875_v38  ;;  %v3932_v38 = vpack.c.bf16 %v3352_v29, %v3351_v59 }
 0x5eb   : > { %3877 = vmatprep.subr.bf16.mxu0 %v4151_v6 }
 0x5ee   : > { %3879 = vmatpush1.bf16.msra.mxu0 %v3878_v12  ;;  %v2713_v12 = vld [vmem:[%s6059_s9 + $0x68] sm:$0xff] }
 0x5ef   : > { %3880 = vmatprep.subr.bf16.mxu0 %v4151_v6  ;;  %v3953_v18 = vpack.c.bf16 %v2713_v12, %v2712_v10 }
 0x5f1   : > { %2503 = vmatmul.mubr.f32.vlgmr.msra.gmra.mrb[12].mxu0 %v2433_v26  ;;  %3954 = vmatpush3.bf16.msra.mxu1 %v3953_v18  ;;  %v2792_v26 = vld [vmem:[%s6061_s11 + $0x8] sm:$0xff] }
 0x5f2   : > { %3882 = vmatpush1.bf16.msra.mxu0 %v3881_v15  ;;  %3334 = vmatprep.mubr.msk.f32.mxu0 %vm2243_vm14, %v2529_v13  ;;  %v2791_v15 = vld [vmem:[%s6061_s11] sm:$0xff] }
 0x5f3   : > { %3883 = vmatprep.subr.bf16.mxu0 %v4151_v6  ;;  %3417 = vmatprep.subr.mxu1 %v4148_v7 }
 0x5f5   : > { %3418 = vmatpush3.msra.mxu1 %v2714_v40 }
 0x5f6   : > { %3885 = vmatpush1.bf16.msra.mxu0 %v3884_v17  ;;  %3955 = vmatprep.subr.bf16.mxu1 %v4151_v6  ;;  %v3956_v17 = vpack.c.bf16 %v2792_v26, %v2791_v15 }
 0x5f7   : > { %3886 = vmatprep.subr.bf16.mxu0 %v4151_v6 }
 0x5fa   : > { %3888 = vmatpush1.bf16.msra.mxu0 %v3887_v20  ;;  %v2794_v20 = vld [vmem:[%s6061_s11 + $0x18] sm:$0xff] }
 0x5fb   : > { %3889 = vmatprep.subr.bf16.mxu0 %v4151_v6  ;;  %v3959_v21 = vpack.c.bf16 %v2794_v20, %v2793_v19 }
 0x5fe   : > { %3891 = vmatpush1.bf16.msra.mxu0 %v3890_v28  ;;  %v2796_v28 = vld [vmem:[%s6061_s11 + $0x28] sm:$0xff] }
 0x5ff   : > { %3892 = vmatprep.subr.bf16.mxu0 %v4151_v6  ;;  %v3962_v32 = vpack.c.bf16 %v2796_v28, %v2795_v25 }
 0x602   : > { %3894 = vmatpush1.bf16.msra.mxu0 %v3893_v27  ;;  %v2798_v27 = vld [vmem:[%s6061_s11 + $0x38] sm:$0xff] }
 0x603   : > { %3895 = vmatprep.subr.bf16.mxu0 %v4151_v6  ;;  %v3965_v36 = vpack.c.bf16 %v2798_v27, %v2797_v8 }
 0x606   : > { %3897 = vmatpush1.bf16.msra.mxu0 %v3896_v35  ;;  %v2800_v35 = vld [vmem:[%s6061_s11 + $0x48] sm:$0xff] }
 0x607   : > { %3898 = vmatprep.subr.bf16.mxu0 %v4151_v6  ;;  %v3968_v39 = vpack.c.bf16 %v2800_v35, %v2799_v33 }
 0x60a   : > { %3900 = vmatpush1.bf16.msra.mxu0 %v3899_v42 }
 0x60b   : > { %3901 = vmatprep.subr.bf16.mxu0 %v4151_v6 }
 0x60e   : > { %3903 = vmatpush1.bf16.msra.mxu0 %v3902_v51 }
 0x60f   : > { %3904 = vmatprep.subr.bf16.mxu0 %v4151_v6 }
 0x612   : > { %3906 = vmatpush1.bf16.msra.mxu0 %v3905_v30 }
 0x613   : > { %3907 = vmatprep.subr.bf16.mxu0 %v4151_v6 }
 0x615   : > { %2598 = vmatmul.mubr.f32.vlgmr.msra.gmra.mrb[12].mxu0 %v2528_v61 }
 0x616   : > { %3909 = vmatpush1.bf16.msra.mxu0 %v3908_v60  ;;  %3353 = vmatprep.mubr.msk.f32.mxu0 %vm2243_vm14, %v2624_v3 }
 0x617   : > { %3910 = vmatprep.subr.bf16.mxu0 %v4151_v6 }
 0x61a   : > { %3912 = vmatpush1.bf16.msra.mxu0 %v3911_v0 }
 0x61b   : > { %3913 = vmatprep.subr.bf16.mxu0 %v4151_v6 }
 0x61e   : > { %3915 = vmatpush1.bf16.msra.mxu0 %v3914_v37 }
 0x61f   : > { %3916 = vmatprep.subr.bf16.mxu0 %v4151_v6 }
 0x622   : > { %3918 = vmatpush1.bf16.msra.mxu0 %v3917_v47 }
 0x623   : > { %3919 = vmatprep.subr.bf16.mxu0 %v4151_v6 }
 0x626   : > { %3921 = vmatpush1.bf16.msra.mxu0 %v3920_v11 }
 0x627   : > { %3922 = vmatprep.subr.bf16.mxu0 %v4151_v6 }
 0x62a   : > { %3924 = vmatpush1.bf16.msra.mxu0 %v3923_v44 }
 0x62b   : > { %3925 = vmatprep.subr.bf16.mxu0 %v4151_v6 }
 0x62e   : > { %3927 = vmatpush1.bf16.msra.mxu0 %v3926_v2 }
 0x62f   : > { %3928 = vmatprep.subr.bf16.mxu0 %v4151_v6 }
 0x632   : > { %3930 = vmatpush1.bf16.msra.mxu0 %v3929_v23 }
 0x633   : > { %3931 = vmatprep.subr.bf16.mxu0 %v4151_v6 }
 0x636   : > { %3933 = vmatpush1.bf16.msra.mxu0 %v3932_v38 }
 0x639   : > { %2693 = vmatmul.mubr.f32.vlgmr.msra.gmra.mrb[12].mxu0 %v2623_v9 }
 0x70c   : > { %v2694_v31 = vpop.f32.mrb[12].mxu0 }
 0x70d   : > { %v3988_v14 = vadd.f32 %v2694_v31, %v2224_v43  ;;  %v2696_v13 = vpop.f32.mrb[13].mxu0 }
 0x70f   : > { %v2699_v24 = vmax.f32 %v3988_v14, 0.0 }
 0x711   : > { %3420 = vmatmul.mubr.msk.f32.vlgmr.msra.gmra.mrb[18].mxu1 %vm2716_vm0, %v2699_v24 }
 0x712   : > { %3957 = vmatpush3.bf16.msra.mxu1 %v3956_v17  ;;  %3444 = vmatprep.mubr.msk.f32.mxu1 %vm4153_vm15, %v4148_v7 }
 0x713   : > { %3958 = vmatprep.subr.bf16.mxu1 %v4151_v6 }
 0x716   : > { %3960 = vmatpush3.bf16.msra.mxu1 %v3959_v21 }
 0x717   : > { %3961 = vmatprep.subr.bf16.mxu1 %v4151_v6 }
 0x71a   : > { %3963 = vmatpush3.bf16.msra.mxu1 %v3962_v32 }
 0x71b   : > { %3964 = vmatprep.subr.bf16.mxu1 %v4151_v6 }
 0x71e   : > { %3966 = vmatpush3.bf16.msra.mxu1 %v3965_v36 }
 0x71f   : > { %3967 = vmatprep.subr.bf16.mxu1 %v4151_v6  ;;  %v2715_v6 = vld [vmem:[%s6060_s10] sm:$0x1] }
 0x722   : > { %3969 = vmatpush3.bf16.msra.mxu1 %v3968_v39 }
 0x723   : > { %3442 = vmatprep.subr.mxu1 %v4148_v7  ;;  %v2802_v7 = vld [vmem:[%s6062_s12] sm:$0x1] }
 0x726   : > { %3443 = vmatpush3.msk.msra.mxu1 %vm999_vm1, %v2801_v41  ;;  %vm2880_vm1 = vcmask 73728  }
 0x7e4   : > { %v2786_v42 = vpop.f32.mrb[18].mxu1 }
 0x7e5   : > { %v2787_v45 = vadd.f32 %v2786_v42, %v2715_v6  ;;  %v3421_v48 = vpop.f32.mrb[19].mxu1 }
 0x7e7   : > { %v2790_v51 = vmax.f32 %v2787_v45, 0.0 }
 0x7e9   : > { %3445 = vmatmul.mubr.msk.f32.vlgmr.msra.gmra.mrb[20].mxu1 %vm2803_vm2, %v2790_v51 }
 0x8bc   : > { %v2876_v52 = vpop.f32.mrb[20].mxu1 }
 0x8bd   : > { %v2877_v55 = vadd.f32 %v2876_v52, %v2802_v7  ;;  %v3446_v30 = vpop.f32.mrb[21].mxu1 }
 0x8bf   : > { %2881 = vst.msk [vmem:[%s432_s24] sm:$0x1] %vm2880_vm1, %v2877_v55 }
 0x8c0   : > { %4097 = shalt.err (!%p4094_p3)
}
 0x8c1   : > { %s4098_s22 = scalar_lea.hbm %s6008_s17, 16  ;;  %s4102_s24 = scalar_lea.hbm %s6063_s13, 32 }
 0x8c2   : > { %p4099_p4 = scmp.ne.s32.totalorder %s6008_s17, %s4098_s22  ;;  %p4103_p9 = scmp.lt.u32.totalorder %s6008_s17, %s6063_s13 }
 0x8c3   : > { %p4104_p10 = scmp.lt.u32.totalorder %s4102_s24, %s4098_s22  ;;  %p4106_p12 = scmp.lt.u32.totalorder %s4098_s22, %s6008_s17 }
 0x8c4   : > { %p4100_p7 = pnand %p4099_p4, %p4263_p5 }
 0x8c5   : > { %p4105_p11 = por %p4104_p10, %p4103_p9 }
 0x8c6   : > { %p4101_p8 = pneg %p4100_p7 }
 0x8c7   : > { %p4107_p13 = por %p4106_p12, %p4105_p11 }
 0x8c9   : > { %p4108_p0 = pnand %p4107_p13, %p4101_p8 }
 0x8cb   : > { %4111 = shalt.err (!%p4108_p0)
}
 0x8cc   : > { %4039 = dma.vmem_to_hbm [thread:$0]  (%p4263_p5), %s6010_s19, 16, %s6008_s17, %s2883_s16  }
 0x8cd PF: > { %p4045_p1 = scmp.ge.s32.totalorder %s4146_s28, 2  ;;  %s2907_s29 = sand.u32 1, %s4134_s25  }
 0x8ce   : > { %s2908_s15 = scalar_lea.sflag [#allocation3], %s2907_s29 }
 0x8cf   : > { %p4042_p2 = pnand %p4045_p1, %p4267_p6 }
 0x8d1   : > { %4129 = dma.done.wait (!%p4042_p2), %s2908_s15, 16  }
 0x8d2   : > { %4131 = vsyncadd (!%p4042_p2), %s2908_s15, 4294967280  ;;  %s6075_s28 = sld [smem:[#allocation6_spill]]  ;;  %s6076_s23 = sld [smem:[#allocation5_spill]] }
 0x8d3   : > { %s6077_s27 = sld [smem:[#allocation7_spill]]  ;;  %s6078_s25 = smov %s4138_s26 }
 0x8d8   : > { %p23_p3 = scmp.ge.s32.totalorder %s6075_s28, 4   ;;  %s6079_s26 = smov %s6076_s23 }
 0x8da   :  { %25 = sbr.rel (!%p23_p3) target bundleno = 3 (0x3), region = 121 }
 0x8e1   :  { %2912 = vsyncpa [#allocation3], 1 }
 0x8e2   :  { %2914 = vsyncpa [#allocation3 + $0x1], 1 }

</bundles_post_ra>
